<compile_context>
chip_gen: v5e
topology: v5e:2x2
jax: 0.10.0
libtpu: 0.0.40
codegen_flags: <defaults>
</compile_context>

<pallas_src>
import jax
import jax.numpy as jnp
from jax import lax
from jax.experimental import pallas as pl
from jax.experimental.pallas import tpu as pltpu


def _round_up(x, m):
    return (x + m - 1) // m * m


# --------------------------------------------------------------------------
# Kernel
# --------------------------------------------------------------------------
def make_lstm_kernel(num_layers, B_pad, H_pad, TC, compute_dtype):
    def kernel(maxlen_ref,      # SMEM scalar prefetch: (1,) int32
               x_ref,           # (TC*B_pad, D_pad) compute_dtype, per-chunk rows
               len_ref,         # (B_pad, H_pad) int32, lengths lane-broadcast
               *rest):
        layer_refs = []
        idx = 0
        for _ in range(num_layers):
            layer_refs.append((rest[idx], rest[idx + 1], rest[idx + 2]))
            idx += 3
        out_ref = rest[idx]            # (B_pad, H_pad) f32, resident output
        h_scr = rest[idx + 1]          # (L, B_pad, H_pad) f32, persistent
        c_scr = rest[idx + 2]          # (L, B_pad, H_pad) f32, persistent
        seq_scr = rest[idx + 3]        # (TC*B_pad, H_pad) f32, per-chunk h-seq
        proj_scr = rest[idx + 4]       # (TC*B_pad, 4*H_pad) f32, projections

        chunk = pl.program_id(0)
        chunk_start = chunk * TC
        max_len = maxlen_ref[0]
        # Dynamic trip count: skip timesteps past max(lengths).
        steps = jnp.clip(max_len - chunk_start, 0, TC)

        @pl.when(chunk == 0)
        def _init():
            h_scr[...] = jnp.zeros_like(h_scr)
            c_scr[...] = jnp.zeros_like(c_scr)
            seq_scr[...] = jnp.zeros_like(seq_scr)

        lengths_v = len_ref[...]       # (B_pad, H_pad) int32

        @pl.when(steps > 0)
        def _chunk_body():
            for l in range(num_layers):
                wih_ref, whh_ref, b_ref = layer_refs[l]

                # ---- hoisted non-recurrent projection: one GEMM per layer/chunk
                if l == 0:
                    layer_in = x_ref[...]                          # bf16
                else:
                    layer_in = seq_scr[...].astype(compute_dtype)  # bf16
                proj_scr[...] = (
                    jnp.dot(layer_in, wih_ref[...],
                            preferred_element_type=jnp.float32)
                    + b_ref[...])

                whh = whh_ref[...]          # (H_pad, 4*H_pad) bf16
                h0 = h_scr[l]               # (B_pad, H_pad) f32
                c0 = c_scr[l]

                def step_fn(t, carry):
                    h_prev, c_prev = carry
                    row = pl.multiple_of(t * B_pad, B_pad)
                    gates = (proj_scr[pl.ds(row, B_pad), :]
                             + jnp.dot(h_prev.astype(compute_dtype), whh,
                                       preferred_element_type=jnp.float32))
                    # Gate slices fall on 128-lane vreg boundaries (H padded).
                    i = jax.nn.sigmoid(gates[:, 0 * H_pad:1 * H_pad])
                    f = jax.nn.sigmoid(gates[:, 1 * H_pad:2 * H_pad])
                    g = jnp.tanh(gates[:, 2 * H_pad:3 * H_pad])
                    o = jax.nn.sigmoid(gates[:, 3 * H_pad:4 * H_pad])
                    c_new = f * c_prev + i * g
                    h_new = o * jnp.tanh(c_new)
                    # pack_padded_sequence semantics: freeze state past length.
                    mask = (chunk_start + t) < lengths_v
                    h_cur = jnp.where(mask, h_new, h_prev)
                    c_cur = jnp.where(mask, c_new, c_prev)
                    seq_scr[pl.ds(row, B_pad), :] = h_cur
                    return h_cur, c_cur

                h_fin, c_fin = lax.fori_loop(0, steps, step_fn, (h0, c0))
                h_scr[l] = h_fin
                c_scr[l] = c_fin

        @pl.when(chunk == pl.num_programs(0) - 1)
        def _finalize():
            out_ref[...] = h_scr[num_layers - 1]

    return kernel


# --------------------------------------------------------------------------
# Parameter preparation (padding, per-gate layout, bf16 cast)
# --------------------------------------------------------------------------
def _pad_gates_T(w, d_in, d_in_pad, H, H_pad):
    """w: [4H, d_in] (PyTorch layout) -> [d_in_pad, 4*H_pad], per-gate padding."""
    wT = jnp.transpose(w)                                   # [d_in, 4H]
    blocks = []
    for g in range(4):
        blk = wT[:, g * H:(g + 1) * H]
        blk = jnp.pad(blk, ((0, d_in_pad - d_in), (0, H_pad - H)))
        blocks.append(blk)
    return jnp.concatenate(blocks, axis=1)


def _pad_gate_bias(b, H, H_pad):
    blocks = [jnp.pad(b[g * H:(g + 1) * H], (0, H_pad - H)) for g in range(4)]
    return jnp.concatenate(blocks)


def prepare_lstm_params(layer_params, fc_params, hidden_size, input_dim,
                        compute_dtype=jnp.bfloat16):
    """layer_params: list of (w_ih [4H,Din], w_hh [4H,H], b_ih [4H], b_hh [4H]);
       fc_params: (fc_w [1,H], fc_b [1]) — PyTorch layouts."""
    H = hidden_size
    H_pad = _round_up(H, 128)
    prepped = []
    d_in = input_dim
    for (w_ih, w_hh, b_ih, b_hh) in layer_params:
        d_in_pad = _round_up(d_in, 128)
        prepped.append((
            _pad_gates_T(w_ih, d_in, d_in_pad, H, H_pad).astype(compute_dtype),
            _pad_gates_T(w_hh, H, H_pad, H, H_pad).astype(compute_dtype),
            _pad_gate_bias(b_ih + b_hh, H, H_pad)
                .reshape(1, 4 * H_pad).astype(jnp.float32),
        ))
        d_in = H
    fc_w, fc_b = fc_params
    return {
        "layers": prepped,
        "fc_w": fc_w.astype(jnp.float32),      # [1, H]
        "fc_b": fc_b.astype(jnp.float32),      # [1]
        "H": H, "H_pad": H_pad, "D": input_dim,
        "num_layers": len(layer_params),
        "compute_dtype": compute_dtype,
    }


# --------------------------------------------------------------------------
# Pallas wrapper
# --------------------------------------------------------------------------
def lstm_final_hidden_pallas(x_combined, lengths, prep, *, time_chunk=64):
    """x_combined: [B, T, D] f32; lengths: [B] int -> final hidden [B, H] f32."""
    B, T, D = x_combined.shape
    H, H_pad = prep["H"], prep["H_pad"]
    L = prep["num_layers"]
    cdt = prep["compute_dtype"]

    B_pad = _round_up(B, 8)
    D_pad = _round_up(D, 128)
    TC = min(time_chunk, T)
    NC = (T + TC - 1) // TC
    T_pad = NC * TC

    # Time-major, padded, flattened to lane-dense (T_pad*B_pad, D_pad) rows so
    # the per-chunk input projection is one real GEMM; cast to bf16 for MXU.
    x_tm = jnp.transpose(x_combined, (1, 0, 2))                    # [T, B, D]
    x_tm = jnp.pad(x_tm, ((0, T_pad - T), (0, B_pad - B), (0, D_pad - D)))
    x2d = x_tm.reshape(T_pad * B_pad, D_pad).astype(cdt)

    len_i32 = lengths.astype(jnp.int32)
    len_bcast = jnp.pad(jnp.broadcast_to(len_i32[:, None], (B, H_pad)),
                        ((0, B_pad - B), (0, 0)))                  # pad rows -> len 0
    max_len = jnp.minimum(jnp.max(len_i32), T).astype(jnp.int32).reshape(1)

    weight_inputs, weight_specs = [], []
    for (wih, whh, b) in prep["layers"]:
        din_pad = wih.shape[0]
        weight_inputs += [wih, whh, b]
        weight_specs += [
            pl.BlockSpec((din_pad, 4 * H_pad), lambda c, ml: (0, 0)),
            pl.BlockSpec((H_pad, 4 * H_pad), lambda c, ml: (0, 0)),
            pl.BlockSpec((1, 4 * H_pad), lambda c, ml: (0, 0)),
        ]

    in_specs = [
        pl.BlockSpec((TC * B_pad, D_pad), lambda c, ml: (c, 0)),   # x chunk rows
        pl.BlockSpec((B_pad, H_pad), lambda c, ml: (0, 0)),        # lengths bcast
    ] + weight_specs

    kernel = make_lstm_kernel(L, B_pad, H_pad, TC, cdt)
    final_h_pad = pl.pallas_call(
        kernel,
        out_shape=jax.ShapeDtypeStruct((B_pad, H_pad), jnp.float32),
        grid_spec=pltpu.PrefetchScalarGridSpec(
            num_scalar_prefetch=1,               # max_len -> SMEM
            grid=(NC,),
            in_specs=in_specs,
            out_specs=pl.BlockSpec((B_pad, H_pad), lambda c, ml: (0, 0)),
            scratch_shapes=[
                pltpu.VMEM((L, B_pad, H_pad), jnp.float32),        # h state
                pltpu.VMEM((L, B_pad, H_pad), jnp.float32),        # c state
                pltpu.VMEM((TC * B_pad, H_pad), jnp.float32),      # layer h-seq
                pltpu.VMEM((TC * B_pad, 4 * H_pad), jnp.float32),  # projections
            ],
        ),
        compiler_params=pltpu.CompilerParams(
            dimension_semantics=("arbitrary",)),   # time recurrence is serial
    )(max_len, x2d, len_bcast, *weight_inputs)
    return final_h_pad[:B, :H]


def unidirectional_lstm_forward(x_num, x_cat, lengths, emb_tables, prep):
    # Embedding lookups + concatenation (gather) stay in plain-JAX glue.
    embs = [tab[x_cat[:, :, i]] for i, tab in enumerate(emb_tables)]
    x_combined = jnp.concatenate([x_num] + embs, axis=2)           # [B, T, D]
    final_h = lstm_final_hidden_pallas(x_combined, lengths, prep)  # [B, H]
    # fc: Dropout (identity in eval) + Linear(H, 1). Lane-width-1 matmul runs
    # as a plain-JAX epilogue (avoid a masked in-kernel MXU issue).
    fc_w, fc_b = prep["fc_w"], prep["fc_b"]
    return final_h @ fc_w.T + fc_b[None, :]


# --------------------------------------------------------------------------
# Plain-JAX reference mirroring the kernel numerics (same padding / bf16 casts)
# --------------------------------------------------------------------------
def lstm_reference(x_combined, lengths, prep):
    B, T, D = x_combined.shape
    H, H_pad = prep["H"], prep["H_pad"]
    L = prep["num_layers"]
    cdt = prep["compute_dtype"]
    B_pad = _round_up(B, 8)
    D_pad = _round_up(D, 128)

    x_tm = jnp.transpose(x_combined, (1, 0, 2))
    x_tm = jnp.pad(x_tm, ((0, 0), (0, B_pad - B), (0, D_pad - D)))
    len_p = jnp.pad(lengths.astype(jnp.int32), (0, B_pad - B))

    h0 = jnp.zeros((L, B_pad, H_pad), jnp.float32)
    c0 = jnp.zeros((L, B_pad, H_pad), jnp.float32)

    def step(carry, xt):
        h, c = carry
        x_t, t = xt
        mask = (t < len_p)[:, None]
        layer_in = x_t.astype(cdt)
        hs, cs = [], []
        for l in range(L):
            wih, whh, b = prep["layers"][l]
            gates = (jnp.dot(layer_in, wih, preferred_element_type=jnp.float32)
                     + jnp.dot(h[l].astype(cdt), whh,
                               preferred_element_type=jnp.float32) + b)
            i = jax.nn.sigmoid(gates[:, 0 * H_pad:1 * H_pad])
            f = jax.nn.sigmoid(gates[:, 1 * H_pad:2 * H_pad])
            g = jnp.tanh(gates[:, 2 * H_pad:3 * H_pad])
            o = jax.nn.sigmoid(gates[:, 3 * H_pad:4 * H_pad])
            c_new = f * c[l] + i * g
            h_new = o * jnp.tanh(c_new)
            h_cur = jnp.where(mask, h_new, h[l])
            c_cur = jnp.where(mask, c_new, c[l])
            hs.append(h_cur)
            cs.append(c_cur)
            layer_in = h_cur.astype(cdt)
        return (jnp.stack(hs), jnp.stack(cs)), None

    (h, _), _ = lax.scan(step, (h0, c0), (x_tm, jnp.arange(T)))
    final_h = h[-1][:B, :H]
    return final_h @ prep["fc_w"].T + prep["fc_b"][None, :]


if __name__ == "__main__":
    B, T = 4, 8
    num_numerical = 4
    vocab_sizes = [7, 5]
    emb_dims = [3, 5]
    H = 32
    num_layers = 2
    D = num_numerical + sum(emb_dims)

    keys = jax.random.split(jax.random.PRNGKey(0), 24)
    ki = iter(keys)

    # Deterministic parameter init (PyTorch-style scales / layouts).
    emb_tables = [jax.random.normal(next(ki), (v, e), jnp.float32)
                  for v, e in zip(vocab_sizes, emb_dims)]
    k_scale = 1.0 / jnp.sqrt(jnp.float32(H))
    raw_layers = []
    d_in = D
    for _ in range(num_layers):
        w_ih = jax.random.uniform(next(ki), (4 * H, d_in), jnp.float32, -k_scale, k_scale)
        w_hh = jax.random.uniform(next(ki), (4 * H, H), jnp.float32, -k_scale, k_scale)
        b_ih = jax.random.uniform(next(ki), (4 * H,), jnp.float32, -k_scale, k_scale)
        b_hh = jax.random.uniform(next(ki), (4 * H,), jnp.float32, -k_scale, k_scale)
        raw_layers.append((w_ih, w_hh, b_ih, b_hh))
        d_in = H
    fc_w = jax.random.uniform(next(ki), (1, H), jnp.float32, -k_scale, k_scale)
    fc_b = jax.random.uniform(next(ki), (1,), jnp.float32, -k_scale, k_scale)

    prep = prepare_lstm_params(raw_layers, (fc_w, fc_b), H, D)

    # Inputs matching forward(x_num, x_cat, lengths).
    x_num = jax.random.normal(next(ki), (B, T, num_numerical), jnp.float32)
    x_cat = jnp.stack(
        [jax.random.randint(next(ki), (B, T), 0, v) for v in vocab_sizes], axis=2)
    lengths = jnp.array([8, 5, 7, 3], jnp.int32)

    out = unidirectional_lstm_forward(x_num, x_cat, lengths, emb_tables, prep)
    out = jax.block_until_ready(out)

    embs = [tab[x_cat[:, :, i]] for i, tab in enumerate(emb_tables)]
    x_combined = jnp.concatenate([x_num] + embs, axis=2)
    ref = lstm_reference(x_combined, lengths, prep)

    assert out.shape == (B, 1)
    assert jnp.allclose(out, ref, atol=2e-3, rtol=2e-3), (out, ref)
    print("KERNEL_OK")
</pallas_src>

<mosaic_0001>
module attributes {stable_mosaic.version = 11 : i64} {
  func.func @kernel(%arg0: i32, %arg1: memref<1xi32, #tpu.memory_space<smem>>, %arg2: memref<64x128xbf16, #tpu.memory_space<vmem>>, %arg3: memref<8x128xi32, #tpu.memory_space<vmem>>, %arg4: memref<128x512xbf16, #tpu.memory_space<vmem>>, %arg5: memref<128x512xbf16, #tpu.memory_space<vmem>>, %arg6: memref<1x512xf32, #tpu.memory_space<vmem>>, %arg7: memref<128x512xbf16, #tpu.memory_space<vmem>>, %arg8: memref<128x512xbf16, #tpu.memory_space<vmem>>, %arg9: memref<1x512xf32, #tpu.memory_space<vmem>>, %arg10: memref<8x128xf32, #tpu.memory_space<vmem>>, %arg11: memref<2x8x128xf32, #tpu.memory_space<vmem>>, %arg12: memref<2x8x128xf32, #tpu.memory_space<vmem>>, %arg13: memref<64x128xf32, #tpu.memory_space<vmem>>, %arg14: memref<64x512xf32, #tpu.memory_space<vmem>>) attributes {dimension_semantics = [#tpu.dimension_semantics<arbitrary>], iteration_bounds = array<i64: 1>, scalar_prefetch = 1 : i64, scratch_operands = 4 : i64, tpu.core_type = #tpu.core_type<tc>, window_params = [{transform_indices = @transform_0, window_bounds = array<i64: 64, 128>}, {pipeline_mode = #tpu.pipeline_mode<synchronous>, transform_indices = @transform_1, window_bounds = array<i64: 8, 128>}, {pipeline_mode = #tpu.pipeline_mode<synchronous>, transform_indices = @transform_2, window_bounds = array<i64: 128, 512>}, {pipeline_mode = #tpu.pipeline_mode<synchronous>, transform_indices = @transform_3, window_bounds = array<i64: 128, 512>}, {pipeline_mode = #tpu.pipeline_mode<synchronous>, transform_indices = @transform_4, window_bounds = array<i64: 1, 512>}, {pipeline_mode = #tpu.pipeline_mode<synchronous>, transform_indices = @transform_5, window_bounds = array<i64: 128, 512>}, {pipeline_mode = #tpu.pipeline_mode<synchronous>, transform_indices = @transform_6, window_bounds = array<i64: 128, 512>}, {pipeline_mode = #tpu.pipeline_mode<synchronous>, transform_indices = @transform_7, window_bounds = array<i64: 1, 512>}, {pipeline_mode = #tpu.pipeline_mode<synchronous>, transform_indices = @transform_8, window_bounds = array<i64: 8, 128>}]} {
    %c8_i32 = arith.constant 8 : i32
    %0 = arith.muli %arg0, %c8_i32 : i32
    %c0 = arith.constant 0 : index
    %1 = memref.load %arg1[%c0] : memref<1xi32, #tpu.memory_space<smem>>
    %2 = arith.subi %1, %0 : i32
    %c0_i32 = arith.constant 0 : i32
    %c8_i32_0 = arith.constant 8 : i32
    %3 = arith.maxsi %c0_i32, %2 : i32
    %4 = arith.minsi %c8_i32_0, %3 : i32
    %c0_i32_1 = arith.constant 0 : i32
    %5 = arith.cmpi eq, %arg0, %c0_i32_1 : i32
    %6 = arith.extui %5 : i1 to i32
    %c0_i32_2 = arith.constant 0 : i32
    %7 = arith.cmpi ne, %6, %c0_i32_2 : i32
    scf.if %7 {
      %cst = arith.constant 0.000000e+00 : f32
      %15 = vector.broadcast %cst : f32 to vector<2x8x128xf32>
      %c0_9 = arith.constant 0 : index
      %c0_10 = arith.constant 0 : index
      %c0_11 = arith.constant 0 : index
      %16 = vector.load %arg11[%c0_9, %c0_10, %c0_11] : memref<2x8x128xf32, #tpu.memory_space<vmem>>, vector<2x8x128xf32>
      tpu.vector_store %arg11[%c0_9, %c0_10, %c0_11], %15 {strides = array<i32>} : memref<2x8x128xf32, #tpu.memory_space<vmem>>, vector<2x8x128xf32>,
      %cst_12 = arith.constant 0.000000e+00 : f32
      %17 = vector.broadcast %cst_12 : f32 to vector<2x8x128xf32>
      %c0_13 = arith.constant 0 : index
      %c0_14 = arith.constant 0 : index
      %c0_15 = arith.constant 0 : index
      %18 = vector.load %arg12[%c0_13, %c0_14, %c0_15] : memref<2x8x128xf32, #tpu.memory_space<vmem>>, vector<2x8x128xf32>
      tpu.vector_store %arg12[%c0_13, %c0_14, %c0_15], %17 {strides = array<i32>} : memref<2x8x128xf32, #tpu.memory_space<vmem>>, vector<2x8x128xf32>,
      %cst_16 = arith.constant 0.000000e+00 : f32
      %19 = vector.broadcast %cst_16 : f32 to vector<64x128xf32>
      %c0_17 = arith.constant 0 : index
      %c0_18 = arith.constant 0 : index
      %20 = vector.load %arg13[%c0_17, %c0_18] : memref<64x128xf32, #tpu.memory_space<vmem>>, vector<64x128xf32>
      tpu.vector_store %arg13[%c0_17, %c0_18], %19 {strides = array<i32>} : memref<64x128xf32, #tpu.memory_space<vmem>>, vector<64x128xf32>,
    } else {
    }
    %c0_3 = arith.constant 0 : index
    %c0_4 = arith.constant 0 : index
    %8 = vector.load %arg3[%c0_3, %c0_4] : memref<8x128xi32, #tpu.memory_space<vmem>>, vector<8x128xi32>
    %c0_i32_5 = arith.constant 0 : i32
    %9 = arith.cmpi sgt, %4, %c0_i32_5 : i32
    %10 = arith.extui %9 : i1 to i32
    %c0_i32_6 = arith.constant 0 : i32
    %11 = arith.cmpi ne, %10, %c0_i32_6 : i32
    scf.if %11 {
      %c0_9 = arith.constant 0 : index
      %c0_10 = arith.constant 0 : index
      %15 = vector.load %arg2[%c0_9, %c0_10] : memref<64x128xbf16, #tpu.memory_space<vmem>>, vector<64x128xbf16>
      %c0_11 = arith.constant 0 : index
      %c0_12 = arith.constant 0 : index
      %16 = vector.load %arg4[%c0_11, %c0_12] : memref<128x512xbf16, #tpu.memory_space<vmem>>, vector<128x512xbf16>
      %cst = arith.constant dense<0.000000e+00> : vector<64x512xf32>
      %17 = tpu.matmul %15, %16, %cst {dimension_numbers = #tpu.dot_dimension_numbers<[1], [0], [0], [1], [0, 0, 1, 1], [], []>} : vector<64x128xbf16>, vector<128x512xbf16>, vector<64x512xf32> -> vector<64x512xf32>
      %c0_13 = arith.constant 0 : index
      %c0_14 = arith.constant 0 : index
      %18 = vector.load %arg6[%c0_13, %c0_14] : memref<1x512xf32, #tpu.memory_space<vmem>>, vector<1x512xf32>
      %19 = vector.broadcast %18 : vector<1x512xf32> to vector<64x512xf32>
      %20 = arith.addf %17, %19 : vector<64x512xf32>
      %c0_15 = arith.constant 0 : index
      %c0_16 = arith.constant 0 : index
      %21 = vector.load %arg14[%c0_15, %c0_16] : memref<64x512xf32, #tpu.memory_space<vmem>>, vector<64x512xf32>
      tpu.vector_store %arg14[%c0_15, %c0_16], %20 {strides = array<i32>} : memref<64x512xf32, #tpu.memory_space<vmem>>, vector<64x512xf32>,
      %c0_17 = arith.constant 0 : index
      %c0_18 = arith.constant 0 : index
      %22 = vector.load %arg5[%c0_17, %c0_18] : memref<128x512xbf16, #tpu.memory_space<vmem>>, vector<128x512xbf16>
      %c0_19 = arith.constant 0 : index
      %c0_20 = arith.constant 0 : index
      %c0_21 = arith.constant 0 : index
      %23 = vector.load %arg11[%c0_19, %c0_20, %c0_21] : memref<2x8x128xf32, #tpu.memory_space<vmem>>, vector<1x8x128xf32>
      %24 = vector.shape_cast %23 : vector<1x8x128xf32> to vector<8x128xf32>
      %c0_22 = arith.constant 0 : index
      %c0_23 = arith.constant 0 : index
      %c0_24 = arith.constant 0 : index
      %25 = vector.load %arg12[%c0_22, %c0_23, %c0_24] : memref<2x8x128xf32, #tpu.memory_space<vmem>>, vector<1x8x128xf32>
      %26 = vector.shape_cast %25 : vector<1x8x128xf32> to vector<8x128xf32>
      %c0_i32_25 = arith.constant 0 : i32
      %27 = arith.subi %4, %c0_i32_25 : i32
      %28 = arith.addi %c0_i32_25, %27 : i32
      %c1_i32 = arith.constant 1 : i32
      %29:2 = scf.for %arg15 = %c0_i32_25 to %28 step %c1_i32 iter_args(%arg16 = %24, %arg17 = %26) -> (vector<8x128xf32>, vector<8x128xf32>)  : i32 {
        %c8_i32_56 = arith.constant 8 : i32
        %58 = arith.muli %arg15, %c8_i32_56 : i32
        %59 = tpu.assume_multiple %58, 8 : i32
        %60 = arith.index_cast %59 : i32 to index
        %c0_57 = arith.constant 0 : index
        %61 = vector.load %arg14[%60, %c0_57] : memref<64x512xf32, #tpu.memory_space<vmem>>, vector<8x512xf32>
        %62 = arith.truncf %arg16 : vector<8x128xf32> to vector<8x128xbf16>
        %cst_58 = arith.constant dense<0.000000e+00> : vector<8x512xf32>
        %63 = tpu.matmul %62, %22, %cst_58 {dimension_numbers = #tpu.dot_dimension_numbers<[1], [0], [0], [1], [0, 0, 1, 1], [], []>} : vector<8x128xbf16>, vector<128x512xbf16>, vector<8x512xf32> -> vector<8x512xf32>
        %64 = arith.addf %61, %63 : vector<8x512xf32>
        %65 = vector.extract_strided_slice %64 {offsets = [0, 0], sizes = [8, 128], strides = [1, 1]} : vector<8x512xf32> to vector<8x128xf32>
        %66 = arith.negf %65 : vector<8x128xf32>
        %67 = math.exp %66 : vector<8x128xf32>
        %cst_59 = arith.constant 1.000000e+00 : f32
        %68 = vector.broadcast %cst_59 : f32 to vector<8x128xf32>
        %69 = arith.addf %68, %67 : vector<8x128xf32>
        %70 = arith.divf %68, %69 : vector<8x128xf32>
        %71 = vector.extract_strided_slice %64 {offsets = [0, 128], sizes = [8, 128], strides = [1, 1]} : vector<8x512xf32> to vector<8x128xf32>
        %72 = arith.negf %71 : vector<8x128xf32>
        %73 = math.exp %72 : vector<8x128xf32>
        %cst_60 = arith.constant 1.000000e+00 : f32
        %74 = vector.broadcast %cst_60 : f32 to vector<8x128xf32>
        %75 = arith.addf %74, %73 : vector<8x128xf32>
        %76 = arith.divf %74, %75 : vector<8x128xf32>
        %77 = vector.extract_strided_slice %64 {offsets = [0, 256], sizes = [8, 128], strides = [1, 1]} : vector<8x512xf32> to vector<8x128xf32>
        %78 = math.tanh %77 : vector<8x128xf32>
        %79 = vector.extract_strided_slice %64 {offsets = [0, 384], sizes = [8, 128], strides = [1, 1]} : vector<8x512xf32> to vector<8x128xf32>
        %80 = arith.negf %79 : vector<8x128xf32>
        %81 = math.exp %80 : vector<8x128xf32>
        %cst_61 = arith.constant 1.000000e+00 : f32
        %82 = vector.broadcast %cst_61 : f32 to vector<8x128xf32>
        %83 = arith.addf %82, %81 : vector<8x128xf32>
        %84 = arith.divf %82, %83 : vector<8x128xf32>
        %85 = arith.mulf %76, %arg17 : vector<8x128xf32>
        %86 = arith.mulf %70, %78 : vector<8x128xf32>
        %87 = arith.addf %85, %86 : vector<8x128xf32>
        %88 = math.tanh %87 : vector<8x128xf32>
        %89 = arith.mulf %84, %88 : vector<8x128xf32>
        %90 = arith.addi %0, %arg15 : i32
        %91 = vector.broadcast %90 : i32 to vector<8x128xi32>
        %92 = arith.cmpi slt, %91, %8 : vector<8x128xi32>
        %93 = arith.select %92, %89, %arg16 : vector<8x128xi1>, vector<8x128xf32>
        %94 = arith.select %92, %87, %arg17 : vector<8x128xi1>, vector<8x128xf32>
        %95 = arith.index_cast %59 : i32 to index
        %c0_62 = arith.constant 0 : index
        %96 = vector.load %arg13[%95, %c0_62] : memref<64x128xf32, #tpu.memory_space<vmem>>, vector<8x128xf32>
        tpu.vector_store %arg13[%95, %c0_62], %93 {strides = array<i32>} : memref<64x128xf32, #tpu.memory_space<vmem>>, vector<8x128xf32>,
        scf.yield %93, %94 : vector<8x128xf32>, vector<8x128xf32>
      }
      %c0_26 = arith.constant 0 : index
      %c0_27 = arith.constant 0 : index
      %c0_28 = arith.constant 0 : index
      %30 = vector.load %arg11[%c0_26, %c0_27, %c0_28] : memref<2x8x128xf32, #tpu.memory_space<vmem>>, vector<1x8x128xf32>
      %31 = vector.shape_cast %30 : vector<1x8x128xf32> to vector<8x128xf32>
      %32 = vector.shape_cast %29#0 : vector<8x128xf32> to vector<1x8x128xf32>
      tpu.vector_store %arg11[%c0_26, %c0_27, %c0_28], %32 {strides = array<i32>} : memref<2x8x128xf32, #tpu.memory_space<vmem>>, vector<1x8x128xf32>,
      %c0_29 = arith.constant 0 : index
      %c0_30 = arith.constant 0 : index
      %c0_31 = arith.constant 0 : index
      %33 = vector.load %arg12[%c0_29, %c0_30, %c0_31] : memref<2x8x128xf32, #tpu.memory_space<vmem>>, vector<1x8x128xf32>
      %34 = vector.shape_cast %33 : vector<1x8x128xf32> to vector<8x128xf32>
      %35 = vector.shape_cast %29#1 : vector<8x128xf32> to vector<1x8x128xf32>
      tpu.vector_store %arg12[%c0_29, %c0_30, %c0_31], %35 {strides = array<i32>} : memref<2x8x128xf32, #tpu.memory_space<vmem>>, vector<1x8x128xf32>,
      %c0_32 = arith.constant 0 : index
      %c0_33 = arith.constant 0 : index
      %36 = vector.load %arg13[%c0_32, %c0_33] : memref<64x128xf32, #tpu.memory_space<vmem>>, vector<64x128xf32>
      %37 = arith.truncf %36 : vector<64x128xf32> to vector<64x128xbf16>
      %c0_34 = arith.constant 0 : index
      %c0_35 = arith.constant 0 : index
      %38 = vector.load %arg7[%c0_34, %c0_35] : memref<128x512xbf16, #tpu.memory_space<vmem>>, vector<128x512xbf16>
      %cst_36 = arith.constant dense<0.000000e+00> : vector<64x512xf32>
      %39 = tpu.matmul %37, %38, %cst_36 {dimension_numbers = #tpu.dot_dimension_numbers<[1], [0], [0], [1], [0, 0, 1, 1], [], []>} : vector<64x128xbf16>, vector<128x512xbf16>, vector<64x512xf32> -> vector<64x512xf32>
      %c0_37 = arith.constant 0 : index
      %c0_38 = arith.constant 0 : index
      %40 = vector.load %arg9[%c0_37, %c0_38] : memref<1x512xf32, #tpu.memory_space<vmem>>, vector<1x512xf32>
      %41 = vector.broadcast %40 : vector<1x512xf32> to vector<64x512xf32>
      %42 = arith.addf %39, %41 : vector<64x512xf32>
      %c0_39 = arith.constant 0 : index
      %c0_40 = arith.constant 0 : index
      %43 = vector.load %arg14[%c0_39, %c0_40] : memref<64x512xf32, #tpu.memory_space<vmem>>, vector<64x512xf32>
      tpu.vector_store %arg14[%c0_39, %c0_40], %42 {strides = array<i32>} : memref<64x512xf32, #tpu.memory_space<vmem>>, vector<64x512xf32>,
      %c0_41 = arith.constant 0 : index
      %c0_42 = arith.constant 0 : index
      %44 = vector.load %arg8[%c0_41, %c0_42] : memref<128x512xbf16, #tpu.memory_space<vmem>>, vector<128x512xbf16>
      %c1 = arith.constant 1 : index
      %c0_43 = arith.constant 0 : index
      %c0_44 = arith.constant 0 : index
      %45 = vector.load %arg11[%c1, %c0_43, %c0_44] : memref<2x8x128xf32, #tpu.memory_space<vmem>>, vector<1x8x128xf32>
      %46 = vector.shape_cast %45 : vector<1x8x128xf32> to vector<8x128xf32>
      %c1_45 = arith.constant 1 : index
      %c0_46 = arith.constant 0 : index
      %c0_47 = arith.constant 0 : index
      %47 = vector.load %arg12[%c1_45, %c0_46, %c0_47] : memref<2x8x128xf32, #tpu.memory_space<vmem>>, vector<1x8x128xf32>
      %48 = vector.shape_cast %47 : vector<1x8x128xf32> to vector<8x128xf32>
      %c0_i32_48 = arith.constant 0 : i32
      %49 = arith.subi %4, %c0_i32_48 : i32
      %50 = arith.addi %c0_i32_48, %49 : i32
      %c1_i32_49 = arith.constant 1 : i32
      %51:2 = scf.for %arg15 = %c0_i32_48 to %50 step %c1_i32_49 iter_args(%arg16 = %46, %arg17 = %48) -> (vector<8x128xf32>, vector<8x128xf32>)  : i32 {
        %c8_i32_56 = arith.constant 8 : i32
        %58 = arith.muli %arg15, %c8_i32_56 : i32
        %59 = tpu.assume_multiple %58, 8 : i32
        %60 = arith.index_cast %59 : i32 to index
        %c0_57 = arith.constant 0 : index
        %61 = vector.load %arg14[%60, %c0_57] : memref<64x512xf32, #tpu.memory_space<vmem>>, vector<8x512xf32>
        %62 = arith.truncf %arg16 : vector<8x128xf32> to vector<8x128xbf16>
        %cst_58 = arith.constant dense<0.000000e+00> : vector<8x512xf32>
        %63 = tpu.matmul %62, %44, %cst_58 {dimension_numbers = #tpu.dot_dimension_numbers<[1], [0], [0], [1], [0, 0, 1, 1], [], []>} : vector<8x128xbf16>, vector<128x512xbf16>, vector<8x512xf32> -> vector<8x512xf32>
        %64 = arith.addf %61, %63 : vector<8x512xf32>
        %65 = vector.extract_strided_slice %64 {offsets = [0, 0], sizes = [8, 128], strides = [1, 1]} : vector<8x512xf32> to vector<8x128xf32>
        %66 = arith.negf %65 : vector<8x128xf32>
        %67 = math.exp %66 : vector<8x128xf32>
        %cst_59 = arith.constant 1.000000e+00 : f32
        %68 = vector.broadcast %cst_59 : f32 to vector<8x128xf32>
        %69 = arith.addf %68, %67 : vector<8x128xf32>
        %70 = arith.divf %68, %69 : vector<8x128xf32>
        %71 = vector.extract_strided_slice %64 {offsets = [0, 128], sizes = [8, 128], strides = [1, 1]} : vector<8x512xf32> to vector<8x128xf32>
        %72 = arith.negf %71 : vector<8x128xf32>
        %73 = math.exp %72 : vector<8x128xf32>
        %cst_60 = arith.constant 1.000000e+00 : f32
        %74 = vector.broadcast %cst_60 : f32 to vector<8x128xf32>
        %75 = arith.addf %74, %73 : vector<8x128xf32>
        %76 = arith.divf %74, %75 : vector<8x128xf32>
        %77 = vector.extract_strided_slice %64 {offsets = [0, 256], sizes = [8, 128], strides = [1, 1]} : vector<8x512xf32> to vector<8x128xf32>
        %78 = math.tanh %77 : vector<8x128xf32>
        %79 = vector.extract_strided_slice %64 {offsets = [0, 384], sizes = [8, 128], strides = [1, 1]} : vector<8x512xf32> to vector<8x128xf32>
        %80 = arith.negf %79 : vector<8x128xf32>
        %81 = math.exp %80 : vector<8x128xf32>
        %cst_61 = arith.constant 1.000000e+00 : f32
        %82 = vector.broadcast %cst_61 : f32 to vector<8x128xf32>
        %83 = arith.addf %82, %81 : vector<8x128xf32>
        %84 = arith.divf %82, %83 : vector<8x128xf32>
        %85 = arith.mulf %76, %arg17 : vector<8x128xf32>
        %86 = arith.mulf %70, %78 : vector<8x128xf32>
        %87 = arith.addf %85, %86 : vector<8x128xf32>
        %88 = math.tanh %87 : vector<8x128xf32>
        %89 = arith.mulf %84, %88 : vector<8x128xf32>
        %90 = arith.addi %0, %arg15 : i32
        %91 = vector.broadcast %90 : i32 to vector<8x128xi32>
        %92 = arith.cmpi slt, %91, %8 : vector<8x128xi32>
        %93 = arith.select %92, %89, %arg16 : vector<8x128xi1>, vector<8x128xf32>
        %94 = arith.select %92, %87, %arg17 : vector<8x128xi1>, vector<8x128xf32>
        %95 = arith.index_cast %59 : i32 to index
        %c0_62 = arith.constant 0 : index
        %96 = vector.load %arg13[%95, %c0_62] : memref<64x128xf32, #tpu.memory_space<vmem>>, vector<8x128xf32>
        tpu.vector_store %arg13[%95, %c0_62], %93 {strides = array<i32>} : memref<64x128xf32, #tpu.memory_space<vmem>>, vector<8x128xf32>,
        scf.yield %93, %94 : vector<8x128xf32>, vector<8x128xf32>
      }
      %c1_50 = arith.constant 1 : index
      %c0_51 = arith.constant 0 : index
      %c0_52 = arith.constant 0 : index
      %52 = vector.load %arg11[%c1_50, %c0_51, %c0_52] : memref<2x8x128xf32, #tpu.memory_space<vmem>>, vector<1x8x128xf32>
      %53 = vector.shape_cast %52 : vector<1x8x128xf32> to vector<8x128xf32>
      %54 = vector.shape_cast %51#0 : vector<8x128xf32> to vector<1x8x128xf32>
      tpu.vector_store %arg11[%c1_50, %c0_51, %c0_52], %54 {strides = array<i32>} : memref<2x8x128xf32, #tpu.memory_space<vmem>>, vector<1x8x128xf32>,
      %c1_53 = arith.constant 1 : index
      %c0_54 = arith.constant 0 : index
      %c0_55 = arith.constant 0 : index
      %55 = vector.load %arg12[%c1_53, %c0_54, %c0_55] : memref<2x8x128xf32, #tpu.memory_space<vmem>>, vector<1x8x128xf32>
      %56 = vector.shape_cast %55 : vector<1x8x128xf32> to vector<8x128xf32>
      %57 = vector.shape_cast %51#1 : vector<8x128xf32> to vector<1x8x128xf32>
      tpu.vector_store %arg12[%c1_53, %c0_54, %c0_55], %57 {strides = array<i32>} : memref<2x8x128xf32, #tpu.memory_space<vmem>>, vector<1x8x128xf32>,
    } else {
    }
    %c0_i32_7 = arith.constant 0 : i32
    %12 = arith.cmpi eq, %arg0, %c0_i32_7 : i32
    %13 = arith.extui %12 : i1 to i32
    %c0_i32_8 = arith.constant 0 : i32
    %14 = arith.cmpi ne, %13, %c0_i32_8 : i32
    scf.if %14 {
      %c1 = arith.constant 1 : index
      %c0_9 = arith.constant 0 : index
      %c0_10 = arith.constant 0 : index
      %15 = vector.load %arg11[%c1, %c0_9, %c0_10] : memref<2x8x128xf32, #tpu.memory_space<vmem>>, vector<1x8x128xf32>
      %16 = vector.shape_cast %15 : vector<1x8x128xf32> to vector<8x128xf32>
      %c0_11 = arith.constant 0 : index
      %c0_12 = arith.constant 0 : index
      %17 = vector.load %arg10[%c0_11, %c0_12] : memref<8x128xf32, #tpu.memory_space<vmem>>, vector<8x128xf32>
      tpu.vector_store %arg10[%c0_11, %c0_12], %16 {strides = array<i32>} : memref<8x128xf32, #tpu.memory_space<vmem>>, vector<8x128xf32>,
    } else {
    }
    return
  }
  func.func @transform_0(%arg0: i32, %arg1: memref<1xi32, #tpu.memory_space<smem>>) -> (i32, i32) {
    %c0_i32 = arith.constant 0 : i32
    %c0_i32_0 = arith.constant 0 : i32
    return %arg0, %c0_i32 : i32, i32
  }
  func.func @transform_1(%arg0: i32, %arg1: memref<1xi32, #tpu.memory_space<smem>>) -> (i32, i32) {
    %c0_i32 = arith.constant 0 : i32
    %c0_i32_0 = arith.constant 0 : i32
    %c0_i32_1 = arith.constant 0 : i32
    return %c0_i32, %c0_i32_0 : i32, i32
  }
  func.func @transform_2(%arg0: i32, %arg1: memref<1xi32, #tpu.memory_space<smem>>) -> (i32, i32) {
    %c0_i32 = arith.constant 0 : i32
    %c0_i32_0 = arith.constant 0 : i32
    %c0_i32_1 = arith.constant 0 : i32
    return %c0_i32, %c0_i32_0 : i32, i32
  }
  func.func @transform_3(%arg0: i32, %arg1: memref<1xi32, #tpu.memory_space<smem>>) -> (i32, i32) {
    %c0_i32 = arith.constant 0 : i32
    %c0_i32_0 = arith.constant 0 : i32
    %c0_i32_1 = arith.constant 0 : i32
    return %c0_i32, %c0_i32_0 : i32, i32
  }
  func.func @transform_4(%arg0: i32, %arg1: memref<1xi32, #tpu.memory_space<smem>>) -> (i32, i32) {
    %c0_i32 = arith.constant 0 : i32
    %c0_i32_0 = arith.constant 0 : i32
    %c0_i32_1 = arith.constant 0 : i32
    return %c0_i32, %c0_i32_0 : i32, i32
  }
  func.func @transform_5(%arg0: i32, %arg1: memref<1xi32, #tpu.memory_space<smem>>) -> (i32, i32) {
    %c0_i32 = arith.constant 0 : i32
    %c0_i32_0 = arith.constant 0 : i32
    %c0_i32_1 = arith.constant 0 : i32
    return %c0_i32, %c0_i32_0 : i32, i32
  }
  func.func @transform_6(%arg0: i32, %arg1: memref<1xi32, #tpu.memory_space<smem>>) -> (i32, i32) {
    %c0_i32 = arith.constant 0 : i32
    %c0_i32_0 = arith.constant 0 : i32
    %c0_i32_1 = arith.constant 0 : i32
    return %c0_i32, %c0_i32_0 : i32, i32
  }
  func.func @transform_7(%arg0: i32, %arg1: memref<1xi32, #tpu.memory_space<smem>>) -> (i32, i32) {
    %c0_i32 = arith.constant 0 : i32
    %c0_i32_0 = arith.constant 0 : i32
    %c0_i32_1 = arith.constant 0 : i32
    return %c0_i32, %c0_i32_0 : i32, i32
  }
  func.func @transform_8(%arg0: i32, %arg1: memref<1xi32, #tpu.memory_space<smem>>) -> (i32, i32) {
    %c0_i32 = arith.constant 0 : i32
    %c0_i32_0 = arith.constant 0 : i32
    %c0_i32_1 = arith.constant 0 : i32
    return %c0_i32, %c0_i32_0 : i32, i32
  }
}

</mosaic_0001>

<bundles_post_ra>
// kernel: tpu_custom_call.1
= control target key start
LH: loop header
LB: loop body
LE: loop exit
PB: predicated region body
PF: predicated region fallthrough
CT: control target
= control target key end

     0   :  { %15 = vsyncpa [#allocation9], 0  ;;  %s3397_s0 = inlined_call_operand.<no memory space> [shape: s32[1], index: 0, kind: input, shape index: {}]   ;;  %s3398_s1 = inlined_call_operand.hbm [shape: bf16[64,128], index: 1, kind: input, shape index: {}]   ;;  %s3399_s2 = inlined_call_operand.hbm [shape: s32[8,128], index: 2, kind: input, shape index: {}]   ;;  %s3400_s3 = inlined_call_operand.hbm [shape: bf16[128,512], index: 3, kind: input, shape index: {}]   ;;  %s3401_s4 = inlined_call_operand.hbm [shape: bf16[128,512], index: 4, kind: input, shape index: {}]   ;;  %s3402_s5 = inlined_call_operand.vmem [shape: f32[1,512], index: 5, kind: input, shape index: {}]   ;;  %s3403_s6 = inlined_call_operand.hbm [shape: bf16[128,512], index: 6, kind: input, shape index: {}]   ;;  %s3404_s7 = inlined_call_operand.hbm [shape: bf16[128,512], index: 7, kind: input, shape index: {}]   ;;  %s3405_s8 = inlined_call_operand.vmem [shape: f32[1,512], index: 8, kind: input, shape index: {}]   ;;  %s3406_s9 = inlined_call_operand.hbm [shape: f32[8,128], index: 9, kind: output, shape index: {}]  }
   0x1   :  { %16 = vsyncpa [#allocation12], 0 }
   0x2   :  { %17 = vsyncpa [#allocation15], 0 }
   0x3   :  { %18 = vsyncpa [#allocation18], 0  ;;  %s38_s11 = sshll.u32 %s3399_s2, 4  ;;  %s39_s11 = int_to_ptr.hbm [resolvable:$true] %s38_s11 }
   0x4   :  { %19 = vsyncpa [#allocation10], 0  ;;  %s2702_s12 = smov [#allocation11]   ;;  %s61_s16 = sshll.u32 %s3401_s4, 4  ;;  %s62_s16 = int_to_ptr.hbm [resolvable:$true] %s61_s16 }
   0x5   :  { %s40_s13 = sshll.u32 %s2702_s12, 4  ;;  %s2703_s17 = smov [#allocation14]   ;;  %s41_s13 = int_to_ptr.vmem [resolvable:$true] %s40_s13 }
   0x6   :  { %43 = dma.hbm_to_vmem [thread:$0]  %s39_s11, 128, %s41_s13, [#allocation12]  }
   0x7   :  { %s63_s18 = sshll.u32 %s2703_s17, 4  ;;  %s24_s21 = sshll.u32 %s3398_s1, 4  ;;  %s64_s18 = int_to_ptr.vmem [resolvable:$true] %s63_s18  ;;  %s25_s21 = int_to_ptr.hbm [resolvable:$true] %s24_s21 }
   0x8   :  { %s2704_s2 = smov 256   ;;  %s2705_s22 = smov 16  }
   0x9   :  { %69 = dma.hbm_to_vmem [thread:$0]  %s62_s16, 4096, %s64_s18, [#allocation15], %s2704_s2, %s2704_s2, %s2705_s22  }
   0xa   :  { %s2706_s23 = smov [#allocation8]   ;;  %s48_s27 = sshll.u32 %s3400_s3, 4  ;;  %s49_s27 = int_to_ptr.hbm [resolvable:$true] %s48_s27 }
   0xb   :  { %s26_s24 = sshll.u32 %s2706_s23, 4  ;;  %s2707_s4 = smov 64   ;;  %s27_s24 = int_to_ptr.vmem [resolvable:$true] %s26_s24 }
   0xc   :  { %s2708_s28 = smov 4   ;;  %s2709_s29 = smov [#allocation13]  }
   0xd   :  { %32 = dma.hbm_to_vmem [thread:$0]  %s25_s21, 512, %s27_s24, [#allocation9], %s2707_s4, %s2707_s4, %s2708_s28  }
   0xe   :  { %s50_s30 = sshll.u32 %s2709_s29, 4  ;;  %s76_s11 = sshll.u32 %s3403_s6, 4  ;;  %s51_s30 = int_to_ptr.vmem [resolvable:$true] %s50_s30  ;;  %s77_s11 = int_to_ptr.hbm [resolvable:$true] %s76_s11 }
   0xf   :  { %56 = dma.hbm_to_vmem [thread:$0]  %s49_s27, 4096, %s51_s30, [#allocation12], %s2704_s2, %s2704_s2, %s2705_s22  }
  0x10   :  { %s89_s14 = sshll.u32 %s3404_s7, 4  ;;  %s2710_s15 = smov [#allocation16]   ;;  %s90_s14 = int_to_ptr.hbm [resolvable:$true] %s89_s14 }
  0x11   :  { %s78_s16 = sshll.u32 %s2710_s15, 4  ;;  %s2711_s3 = smov [#allocation17]   ;;  %s79_s16 = int_to_ptr.vmem [resolvable:$true] %s78_s16 }
  0x12   :  { %84 = dma.hbm_to_vmem [thread:$0]  %s77_s11, 4096, %s79_s16, [#allocation15], %s2704_s2, %s2704_s2, %s2705_s22  }
  0x13   :  { %s91_s17 = sshll.u32 %s2711_s3, 4  ;;  %s92_s17 = int_to_ptr.vmem [resolvable:$true] %s91_s17 }
  0x14   :  { %97 = dma.hbm_to_vmem [thread:$0]  %s90_s14, 4096, %s92_s17, [#allocation18], %s2704_s2, %s2704_s2, %s2705_s22  }
  0x15   :  { %2652 = dma.done.wait [#allocation9], 512  }
  0x16   :  { %2653 = vsyncadd [#allocation9], 4294966784 }
  0x17   :  { %2654 = dma.done.wait [#allocation12], 4224  }
  0x18   :  { %2655 = vsyncadd [#allocation12], 4294963072 }
  0x19   :  { %2656 = dma.done.wait [#allocation15], 8192  }
  0x1a   :  { %2657 = vsyncadd [#allocation15], 4294959104 }
  0x1b   :  { %2658 = dma.done.wait [#allocation18], 4096  }
  0x1c   :  { %2659 = vsyncadd [#allocation18], 4294963200  ;;  %p127_p0 = scmp.gt.s32.totalorder %s3397_s0, 0  ;;  %p1636_p1 = scmp.lt.s32.totalorder %s3397_s0, 8  ;;  %v2712_v0 = vmov 0.0   ;;  %v2793_v1 = vld [vmem:[#allocation11] sm:$0xff] }
  0x1d   :  { %135 = vst [vmem:[#allocation2] sm:$0xff] %v2712_v0 }
  0x1e   :  { %s3539_s0 = smov (!%p127_p0, %s3397_s0), 0  ;;  %136 = vst [vmem:[#allocation2 + $0x8] sm:$0xff] %v2712_v0 }
  0x1f   :  { %137 = vst [vmem:[#allocation3 + $0x8] sm:$0xff] %v2712_v0  ;;  %s3541_s0 = smov (!%p1636_p1, %s3539_s0), 8 }
  0x20   :  { %138 = vst [vmem:[#allocation3] sm:$0xff] %v2712_v0  ;;  %p1641_p2 = scmp.le.s32.totalorder %s3541_s0, 0 }
  0x21   :  { %139 = vst [vmem:[#allocation4] sm:$0xff] %v2712_v0 }
  0x22   :  { %140 = vst [vmem:[#allocation4 + $0x8] sm:$0xff] %v2712_v0 }
  0x23   :  { %3407 = vst [vmem:[#allocation25_spill] sm:$0xff] %v2793_v1 }
  0x24   :  { %141 = vst [vmem:[#allocation4 + $0x10] sm:$0xff] %v2712_v0 }
  0x25   :  { %142 = vst [vmem:[#allocation4 + $0x18] sm:$0xff] %v2712_v0  ;;  %151 = sbr.rel (%p1641_p2) target bundleno = 910 (0x38e), region = 65 }
  0x26   :  { %143 = vst [vmem:[#allocation4 + $0x20] sm:$0xff] %v2712_v0 }
  0x27   :  { %144 = vst [vmem:[#allocation4 + $0x28] sm:$0xff] %v2712_v0 }
  0x28   :  { %145 = vst [vmem:[#allocation4 + $0x30] sm:$0xff] %v2712_v0 }
  0x29   :  { %146 = vst [vmem:[#allocation4 + $0x38] sm:$0xff] %v2712_v0 }
  0x2a   :  { %v1772_v2 = vld [vmem:[#allocation13 + $0xe0] sm:$0xf]  ;;  %v2220_v3 = vld [vmem:[#allocation13 + $0xec] sm:$0xf0]  ;;  %v2218_v4 = vld [vmem:[#allocation13 + $0xe4] sm:$0xf] }
  0x2b   :  { %v1773_v5 = vor.u32 %v2220_v3, %v1772_v2  ;;  %v1774_v6 = vld [vmem:[#allocation13 + $0xf0] sm:$0xf0]  ;;  %v1780_v7 = vld [vmem:[#allocation13 + $0xe8] sm:$0xf]  ;;  %v2221_v8 = vld [vmem:[#allocation13 + $0xf4] sm:$0xf0] }
  0x2c   :  { %v1777_v9 = vor.u32 %v2218_v4, %v1774_v6  ;;  %v1781_v10 = vor.u32 %v2221_v8, %v1780_v7  ;;  %v2219_v11 = vld [vmem:[#allocation13 + $0xec] sm:$0xf]  ;;  %v1782_v12 = vld [vmem:[#allocation13 + $0xf8] sm:$0xf0]  ;;  %v1756_v13 = vld [vmem:[#allocation13 + $0xc0] sm:$0xf] }
  0x2d   :  { %386 = vmatpush.bf16.msra.mxu0 %v1773_v5  ;;  %v1785_v14 = vor.u32 %v2219_v11, %v1782_v12  ;;  %v2216_v15 = vld [vmem:[#allocation13 + $0xcc] sm:$0xf0]  ;;  %v2214_v16 = vld [vmem:[#allocation13 + $0xc4] sm:$0xf]  ;;  %v1758_v17 = vld [vmem:[#allocation13 + $0xd0] sm:$0xf0] }
  0x2e   :  { %415 = vmatpush.bf16.msra.mxu1 %v1777_v9  ;;  %444 = vmatpush.bf16.msra.mxu2 %v1781_v10  ;;  %v1757_v18 = vor.u32 %v2216_v15, %v1756_v13  ;;  %v1761_v19 = vor.u32 %v2214_v16, %v1758_v17  ;;  %v1764_v20 = vld [vmem:[#allocation13 + $0xc8] sm:$0xf]  ;;  %v2217_v21 = vld [vmem:[#allocation13 + $0xd4] sm:$0xf0]  ;;  %v2215_v22 = vld [vmem:[#allocation13 + $0xcc] sm:$0xf] }
  0x2f   :  { %473 = vmatpush.bf16.msra.mxu3 %v1785_v14  ;;  %v1765_v23 = vor.u32 %v2217_v21, %v1764_v20  ;;  %v1766_v24 = vld [vmem:[#allocation13 + $0xd8] sm:$0xf0]  ;;  %v1740_v25 = vld [vmem:[#allocation13 + $0xa0] sm:$0xf]  ;;  %v2212_v26 = vld [vmem:[#allocation13 + $0xac] sm:$0xf0] }
  0x30   :  { %v1769_v27 = vor.u32 %v2215_v22, %v1766_v24  ;;  %v2210_v28 = vld [vmem:[#allocation13 + $0xa4] sm:$0xf]  ;;  %v1742_v29 = vld [vmem:[#allocation13 + $0xb0] sm:$0xf0]  ;;  %v1748_v30 = vld [vmem:[#allocation13 + $0xa8] sm:$0xf]  ;;  %v1741_v31 = vor.u32 %v2212_v26, %v1740_v25 }
  0x31   :  { %387 = vmatpush.bf16.msra.mxu0 %v1757_v18  ;;  %v2213_v32 = vld [vmem:[#allocation13 + $0xb4] sm:$0xf0]  ;;  %v2211_v33 = vld [vmem:[#allocation13 + $0xac] sm:$0xf]  ;;  %v1750_v34 = vld [vmem:[#allocation13 + $0xb8] sm:$0xf0]  ;;  %v1745_v35 = vor.u32 %v2210_v28, %v1742_v29 }
  0x32   :  { %416 = vmatpush.bf16.msra.mxu1 %v1761_v19  ;;  %445 = vmatpush.bf16.msra.mxu2 %v1765_v23  ;;  %v1749_v36 = vor.u32 %v2213_v32, %v1748_v30  ;;  %v1724_v37 = vld [vmem:[#allocation13 + $0x80] sm:$0xf]  ;;  %v2208_v38 = vld [vmem:[#allocation13 + $0x8c] sm:$0xf0]  ;;  %v2206_v39 = vld [vmem:[#allocation13 + $0x84] sm:$0xf]  ;;  %v1753_v40 = vor.u32 %v2211_v33, %v1750_v34 }
  0x33   :  { %474 = vmatpush.bf16.msra.mxu3 %v1769_v27  ;;  %v1726_v41 = vld [vmem:[#allocation13 + $0x90] sm:$0xf0]  ;;  %v1732_v42 = vld [vmem:[#allocation13 + $0x88] sm:$0xf]  ;;  %v2209_v43 = vld [vmem:[#allocation13 + $0x94] sm:$0xf0]  ;;  %v1725_v46 = vor.u32 %v2208_v38, %v1724_v37 }
  0x34   :  { %v2207_v44 = vld [vmem:[#allocation13 + $0x8c] sm:$0xf]  ;;  %v1734_v45 = vld [vmem:[#allocation13 + $0x98] sm:$0xf0]  ;;  %v1729_v47 = vor.u32 %v2206_v39, %v1726_v41  ;;  %v1733_v48 = vor.u32 %v2209_v43, %v1732_v42  ;;  %v1708_v49 = vld [vmem:[#allocation13 + $0x60] sm:$0xf] }
  0x35   :  { %388 = vmatpush.bf16.msra.mxu0 %v1741_v31  ;;  %v2204_v50 = vld [vmem:[#allocation13 + $0x6c] sm:$0xf0]  ;;  %v2202_v51 = vld [vmem:[#allocation13 + $0x64] sm:$0xf]  ;;  %v1737_v52 = vor.u32 %v2207_v44, %v1734_v45  ;;  %v1710_v53 = vld [vmem:[#allocation13 + $0x70] sm:$0xf0] }
  0x36   :  { %417 = vmatpush.bf16.msra.mxu1 %v1745_v35  ;;  %446 = vmatpush.bf16.msra.mxu2 %v1749_v36  ;;  %v1716_v54 = vld [vmem:[#allocation13 + $0x68] sm:$0xf]  ;;  %v2205_v55 = vld [vmem:[#allocation13 + $0x74] sm:$0xf0]  ;;  %v2203_v56 = vld [vmem:[#allocation13 + $0x6c] sm:$0xf]  ;;  %v1709_v58 = vor.u32 %v2204_v50, %v1708_v49  ;;  %v1713_v59 = vor.u32 %v2202_v51, %v1710_v53 }
  0x37   :  { %475 = vmatpush.bf16.msra.mxu3 %v1753_v40  ;;  %v1718_v57 = vld [vmem:[#allocation13 + $0x78] sm:$0xf0]  ;;  %v1717_v60 = vor.u32 %v2205_v55, %v1716_v54  ;;  %v1692_v61 = vld [vmem:[#allocation13 + $0x40] sm:$0xf]  ;;  %v2200_v62 = vld [vmem:[#allocation13 + $0x4c] sm:$0xf0] }
  0x38   :  { %v2198_v63 = vld [vmem:[#allocation13 + $0x44] sm:$0xf]  ;;  %v1721_v0 = vor.u32 %v2203_v56, %v1718_v57  ;;  %v1694_v2 = vld [vmem:[#allocation13 + $0x50] sm:$0xf0]  ;;  %v1700_v3 = vld [vmem:[#allocation13 + $0x48] sm:$0xf]  ;;  %v1693_v7 = vor.u32 %v2200_v62, %v1692_v61 }
  0x39   :  { %389 = vmatpush.bf16.msra.mxu0 %v1725_v46  ;;  %v2201_v4 = vld [vmem:[#allocation13 + $0x54] sm:$0xf0]  ;;  %v2199_v5 = vld [vmem:[#allocation13 + $0x4c] sm:$0xf]  ;;  %v1702_v6 = vld [vmem:[#allocation13 + $0x58] sm:$0xf0]  ;;  %v1697_v8 = vor.u32 %v2198_v63, %v1694_v2 }
  0x3a   :  { %418 = vmatpush.bf16.msra.mxu1 %v1729_v47  ;;  %447 = vmatpush.bf16.msra.mxu2 %v1733_v48  ;;  %v1701_v9 = vor.u32 %v2201_v4, %v1700_v3  ;;  %v1676_v10 = vld [vmem:[#allocation13 + $0x20] sm:$0xf]  ;;  %v2196_v11 = vld [vmem:[#allocation13 + $0x2c] sm:$0xf0]  ;;  %v2194_v12 = vld [vmem:[#allocation13 + $0x24] sm:$0xf]  ;;  %v1705_v13 = vor.u32 %v2199_v5, %v1702_v6 }
  0x3b   :  { %476 = vmatpush.bf16.msra.mxu3 %v1737_v52  ;;  %v1678_v14 = vld [vmem:[#allocation13 + $0x30] sm:$0xf0]  ;;  %v1684_v15 = vld [vmem:[#allocation13 + $0x28] sm:$0xf]  ;;  %v2197_v16 = vld [vmem:[#allocation13 + $0x34] sm:$0xf0]  ;;  %v1677_v19 = vor.u32 %v2196_v11, %v1676_v10 }
  0x3c   :  { %v2195_v17 = vld [vmem:[#allocation13 + $0x2c] sm:$0xf]  ;;  %v1686_v18 = vld [vmem:[#allocation13 + $0x38] sm:$0xf0]  ;;  %v1681_v20 = vor.u32 %v2194_v12, %v1678_v14  ;;  %v1685_v21 = vor.u32 %v2197_v16, %v1684_v15  ;;  %v1660_v22 = vld [vmem:[#allocation13] sm:$0xf] }
  0x3d   :  { %390 = vmatpush.bf16.msra.mxu0 %v1709_v58  ;;  %v2192_v23 = vld [vmem:[#allocation13 + $0xc] sm:$0xf0]  ;;  %v2190_v24 = vld [vmem:[#allocation13 + $0x4] sm:$0xf]  ;;  %v1689_v25 = vor.u32 %v2195_v17, %v1686_v18  ;;  %v1662_v26 = vld [vmem:[#allocation13 + $0x10] sm:$0xf0] }
  0x3e   :  { %419 = vmatpush.bf16.msra.mxu1 %v1713_v59  ;;  %448 = vmatpush.bf16.msra.mxu2 %v1717_v60  ;;  %v1668_v27 = vld [vmem:[#allocation13 + $0x8] sm:$0xf]  ;;  %v2193_v28 = vld [vmem:[#allocation13 + $0x14] sm:$0xf0]  ;;  %v2191_v29 = vld [vmem:[#allocation13 + $0xc] sm:$0xf]  ;;  %v1661_v31 = vor.u32 %v2192_v23, %v1660_v22  ;;  %v1665_v32 = vor.u32 %v2190_v24, %v1662_v26 }
  0x3f   :  { %477 = vmatpush.bf16.msra.mxu3 %v1721_v0  ;;  %v1670_v30 = vld [vmem:[#allocation13 + $0x18] sm:$0xf0]  ;;  %v1669_v33 = vor.u32 %v2193_v28, %v1668_v27  ;;  %v2187_v36 = vld [vmem:[#allocation8 + $0x8] sm:$0xff]  ;;  %v2188_v37 = vld [vmem:[#allocation8 + $0x10] sm:$0xff] }
  0x40   :  { %v1673_v34 = vor.u32 %v2191_v29, %v1670_v30  ;;  %v2186_v35 = vld [vmem:[#allocation8] sm:$0xff]  ;;  %v2189_v38 = vld [vmem:[#allocation8 + $0x18] sm:$0xff]  ;;  %v2827_v17 = vld [vmem:[#allocation14 + $0x4] sm:$0xf] }
  0x41   :  { %391 = vmatpush.bf16.msra.mxu0 %v1693_v7  ;;  %v192_v39 = vld [vmem:[%s3402_s5] sm:$0xf]  ;;  %3408 = vst [vmem:[#allocation26_spill] sm:$0xff] %v2827_v17  ;;  %v2829_v18 = vld [vmem:[#allocation14] sm:$0xf]  ;;  %v2837_v22 = vld [vmem:[#allocation3 + $0x8] sm:$0xff]  }
  0x42   :  { %420 = vmatpush.bf16.msra.mxu1 %v1697_v8  ;;  %449 = vmatpush.bf16.msra.mxu2 %v1701_v9  ;;  %v2801_v40 = vperm.slane %v192_v39, 0  ;;  %v2803_v41 = vperm.slane %v192_v39, 1  ;;  %v2807_v46 = vperm.slane %v192_v39, 2  ;;  %v2809_v47 = vperm.slane %v192_v39, 3  ;;  %3409 = vst [vmem:[#allocation27_spill] sm:$0xff] %v2829_v18  ;;  %s2987_s5 = smov (!%p1641_p2), 0  }
  0x43   :  { %478 = vmatpush.bf16.msra.mxu3 %v1705_v13  ;;  %v2839_v23 = vld [vmem:[#allocation14 + $0x10] sm:$0xf0]  ;;  %v2841_v24 = vld [vmem:[#allocation14 + $0xc] sm:$0xf0]  ;;  %v2845_v26 = vld [vmem:[#allocation14 + $0x14] sm:$0xf0] }
  0x44   :  { %3412 = vst [vmem:[#allocation30_spill] sm:$0xff] %v2839_v23  ;;  %v2847_v27 = vld [vmem:[#allocation14 + $0x24] sm:$0xf]  ;;  %v2849_v29 = vld [vmem:[#allocation14 + $0x20] sm:$0xf] }
  0x45   :  { %392 = vmatpush.bf16.msra.mxu0 %v1677_v19  ;;  %v2831_v19 = vld [vmem:[#allocation2] sm:$0xff]   ;;  %3413 = vst [vmem:[#allocation31_spill] sm:$0xff] %v2841_v24  ;;  %v2851_v30 = vld [vmem:[#allocation14 + $0x2c] sm:$0xf]  ;;  %v2946_v1 = vld [vmem:[#allocation14 + $0xcc] sm:$0xf0] }
  0x46   :  { %421 = vmatpush.bf16.msra.mxu1 %v1681_v20  ;;  %450 = vmatpush.bf16.msra.mxu2 %v1685_v21  ;;  %v2833_v20 = vld [vmem:[#allocation14 + $0xc] sm:$0xf]  ;;  %v2835_v21 = vld [vmem:[#allocation14 + $0x8] sm:$0xf]  ;;  %3415 = vst [vmem:[#allocation33_spill] sm:$0xff] %v2845_v26 }
  0x47   :  { %479 = vmatpush.bf16.msra.mxu3 %v1689_v25  ;;  %3410 = vst [vmem:[#allocation28_spill] sm:$0xff] %v2833_v20  ;;  %v2843_v25 = vld [vmem:[#allocation14 + $0x18] sm:$0xf0]  ;;  %v2952_v17 = vld [vmem:[#allocation14 + $0xd4] sm:$0xf0] }
  0x48   :  { %3411 = vst [vmem:[#allocation29_spill] sm:$0xff] %v2835_v21  ;;  %v2948_v26 = vld [vmem:[#allocation14 + $0xd8] sm:$0xf0]  ;;  %v2954_v23 = vld [vmem:[#allocation14 + $0xe4] sm:$0xf] }
  0x49   :  { %393 = vmatpush.bf16.msra.mxu0 %v1661_v31  ;;  %3414 = vst [vmem:[#allocation32_spill] sm:$0xff] %v2843_v25  ;;  %v2853_v31 = vld [vmem:[#allocation14 + $0x28] sm:$0xf]  ;;  %v2956_v24 = vld [vmem:[#allocation14 + $0xe0] sm:$0xf] }
  0x4a   :  { %422 = vmatpush.bf16.msra.mxu1 %v1665_v32  ;;  %451 = vmatpush.bf16.msra.mxu2 %v1669_v33  ;;  %3416 = vst [vmem:[#allocation34_spill] sm:$0xff] %v2851_v30  ;;  %v2959_v18 = vld [vmem:[#allocation14 + $0xec] sm:$0xf] }
  0x4b   :  { %480 = vmatpush.bf16.msra.mxu3 %v1673_v34  ;;  %3417 = vst [vmem:[#allocation35_spill] sm:$0xff] %v2853_v31  ;;  %v2963_v31 = vld [vmem:[#allocation14 + $0xf0] sm:$0xf0] }
  0x4c   :  { %394 = vmatmul.bf16.vlgmr.msra.gmra.mxu0 %v2186_v35  ;;  %3433 = vst [vmem:[#allocation51_spill] sm:$0xff] %v2946_v1 }
  0x4d   :  { %423 = vmatmul.bf16.vlgmr.msra.gmra.mxu1 %v2186_v35  ;;  %452 = vmatmul.bf16.vlgmr.msra.gmra.mxu2 %v2186_v35 }
  0x4e   :  { %481 = vmatmul.bf16.vlgmr.msra.gmra.mxu3 %v2186_v35  ;;  %v2856_v35 = vld [vmem:[#allocation14 + $0x30] sm:$0xf0] }
  0x5c   :  { %399 = vmatmul.bf16.gmra.mxu0 %v2187_v36 }
  0x5d   :  { %428 = vmatmul.bf16.gmra.mxu1 %v2187_v36  ;;  %457 = vmatmul.bf16.gmra.mxu2 %v2187_v36 }
  0x5e   :  { %486 = vmatmul.bf16.gmra.mxu3 %v2187_v36  ;;  %v2858_v36 = vld [vmem:[#allocation14 + $0x2c] sm:$0xf0] }
  0x6c   :  { %404 = vmatmul.bf16.gmra.mxu0 %v2188_v37 }
  0x6d   :  { %433 = vmatmul.bf16.gmra.mxu1 %v2188_v37  ;;  %462 = vmatmul.bf16.gmra.mxu2 %v2188_v37 }
  0x6e   :  { %491 = vmatmul.bf16.gmra.mxu3 %v2188_v37  ;;  %v2860_v37 = vld [vmem:[#allocation14 + $0x38] sm:$0xf0] }
  0x6f   :  { %3418 = vst [vmem:[#allocation36_spill] sm:$0xff] %v2860_v37 }
  0x7c   :  { %409 = vmatmul.bf16.gmra.mxu0 %v2189_v38 }
  0x7d   :  { %438 = vmatmul.bf16.gmra.mxu1 %v2189_v38  ;;  %467 = vmatmul.bf16.gmra.mxu2 %v2189_v38 }
  0x7e   :  { %496 = vmatmul.bf16.gmra.mxu3 %v2189_v38 }
  0xc9   :  { %v395_v42 = vpop.f32.mrf.mxu0 }
  0xca   :  { %v396_v43 = vadd.f32 %v395_v42, %v2801_v40  ;;  %v424_v44 = vpop.f32.mrf.mxu1 }
  0xcb   :  { %v425_v45 = vadd.f32 %v424_v44, %v2803_v41  ;;  %v2866_v44 = vld [vmem:[#allocation14 + $0x44] sm:$0xf] }
  0xcc   :  { %502 = vst [vmem:[#allocation5] sm:$0xff] %v396_v43  ;;  %v2864_v43 = vld [vmem:[#allocation14 + $0x34] sm:$0xf0] }
  0xcd   :  { %503 = vst [vmem:[#allocation5 + $0x8] sm:$0xff] %v425_v45  ;;  %v2868_v45 = vld [vmem:[#allocation14 + $0x40] sm:$0xf] }
  0xce   :  { %3419 = vst [vmem:[#allocation37_spill] sm:$0xff] %v2864_v43  ;;  %v2961_v43 = vld [vmem:[#allocation14 + $0xe8] sm:$0xf] }
  0xd0   :  { %v453_v48 = vpop.f32.mrf.mxu2 }
  0xd1   :  { %v454_v49 = vadd.f32 %v453_v48, %v2807_v46  ;;  %v482_v50 = vpop.f32.mrf.mxu3  ;;  %v397_v51 = vpop.f32.mrf.mxu0 }
  0xd2   :  { %v483_v52 = vadd.f32 %v482_v50, %v2809_v47  ;;  %v398_v53 = vadd.f32 %v397_v51, %v2801_v40  ;;  %v426_v54 = vpop.f32.mrf.mxu1  ;;  %v2873_v50 = vld [vmem:[#allocation14 + $0x48] sm:$0xf]  ;;  %v2875_v51 = vld [vmem:[#allocation14 + $0x50] sm:$0xf0] }
  0xd3   :  { %504 = vst [vmem:[#allocation5 + $0x10] sm:$0xff] %v454_v49  ;;  %v427_v55 = vadd.f32 %v426_v54, %v2803_v41  ;;  %v2871_v49 = vld [vmem:[#allocation14 + $0x4c] sm:$0xf]  ;;  %v2881_v54 = vld [vmem:[#allocation14 + $0x54] sm:$0xf0] }
  0xd4   :  { %505 = vst [vmem:[#allocation5 + $0x18] sm:$0xff] %v483_v52  ;;  %v2877_v52 = vld [vmem:[#allocation14 + $0x4c] sm:$0xf0] }
  0xd5   :  { %506 = vst [vmem:[#allocation5 + $0x20] sm:$0xff] %v398_v53  ;;  %v2879_v53 = vld [vmem:[#allocation14 + $0x58] sm:$0xf0] }
  0xd6   :  { %507 = vst [vmem:[#allocation5 + $0x28] sm:$0xff] %v427_v55  ;;  %v2883_v55 = vld [vmem:[#allocation14 + $0x64] sm:$0xf] }
  0xd8   :  { %v455_v56 = vpop.f32.mrf.mxu2 }
  0xd9   :  { %v456_v57 = vadd.f32 %v455_v56, %v2807_v46  ;;  %v484_v58 = vpop.f32.mrf.mxu3  ;;  %v400_v59 = vpop.f32.mrf.mxu0  ;;  %v2885_v56 = vld [vmem:[#allocation14 + $0x60] sm:$0xf] }
  0xda   :  { %v485_v60 = vadd.f32 %v484_v58, %v2809_v47  ;;  %v401_v61 = vadd.f32 %v400_v59, %v2801_v40  ;;  %v429_v62 = vpop.f32.mrf.mxu1  ;;  %v2889_v58 = vld [vmem:[#allocation14 + $0x68] sm:$0xf]  ;;  %v2891_v59 = vld [vmem:[#allocation14 + $0x70] sm:$0xf0] }
  0xdb   :  { %508 = vst [vmem:[#allocation5 + $0x30] sm:$0xff] %v456_v57  ;;  %v430_v63 = vadd.f32 %v429_v62, %v2803_v41  ;;  %v2887_v57 = vld [vmem:[#allocation14 + $0x6c] sm:$0xf]  ;;  %v2895_v62 = vld [vmem:[#allocation14 + $0x78] sm:$0xf0] }
  0xdc   :  { %509 = vst [vmem:[#allocation5 + $0x38] sm:$0xff] %v485_v60 }
  0xdd   :  { %510 = vst [vmem:[#allocation5 + $0x40] sm:$0xff] %v401_v61  ;;  %v2893_v61 = vld [vmem:[#allocation14 + $0x6c] sm:$0xf0] }
  0xde   :  { %511 = vst [vmem:[#allocation5 + $0x48] sm:$0xff] %v430_v63  ;;  %v2897_v63 = vld [vmem:[#allocation14 + $0x74] sm:$0xf0] }
  0xe0   :  { %v458_v0 = vpop.f32.mrf.mxu2 }
  0xe1   :  { %v459_v2 = vadd.f32 %v458_v0, %v2807_v46  ;;  %v487_v3 = vpop.f32.mrf.mxu3  ;;  %v402_v4 = vpop.f32.mrf.mxu0 }
  0xe2   :  { %v488_v5 = vadd.f32 %v487_v3, %v2809_v47  ;;  %v403_v6 = vadd.f32 %v402_v4, %v2801_v40  ;;  %v431_v7 = vpop.f32.mrf.mxu1  ;;  %v2900_v4 = vld [vmem:[#allocation14 + $0x84] sm:$0xf] }
  0xe3   :  { %512 = vst [vmem:[#allocation5 + $0x50] sm:$0xff] %v459_v2  ;;  %v432_v8 = vadd.f32 %v431_v7, %v2803_v41 }
  0xe4   :  { %513 = vst [vmem:[#allocation5 + $0x58] sm:$0xff] %v488_v5  ;;  %v2902_v5 = vld [vmem:[#allocation14 + $0x80] sm:$0xf] }
  0xe5   :  { %514 = vst [vmem:[#allocation5 + $0x60] sm:$0xff] %v403_v6  ;;  %v2904_v6 = vld [vmem:[#allocation14 + $0x8c] sm:$0xf] }
  0xe6   :  { %515 = vst [vmem:[#allocation5 + $0x68] sm:$0xff] %v432_v8 }
  0xe7   :  { %3420 = vst [vmem:[#allocation38_spill] sm:$0xff] %v2900_v4 }
  0xe8   :  { %v460_v9 = vpop.f32.mrf.mxu2  ;;  %3421 = vst [vmem:[#allocation39_spill] sm:$0xff] %v2902_v5 }
  0xe9   :  { %v461_v10 = vadd.f32 %v460_v9, %v2807_v46  ;;  %v489_v11 = vpop.f32.mrf.mxu3  ;;  %v405_v12 = vpop.f32.mrf.mxu0  ;;  %3422 = vst [vmem:[#allocation40_spill] sm:$0xff] %v2904_v6 }
  0xea   :  { %v490_v13 = vadd.f32 %v489_v11, %v2809_v47  ;;  %v406_v14 = vadd.f32 %v405_v12, %v2801_v40  ;;  %v434_v15 = vpop.f32.mrf.mxu1  ;;  %v2910_v11 = vld [vmem:[#allocation14 + $0x90] sm:$0xf0]  ;;  %v2912_v12 = vld [vmem:[#allocation14 + $0x8c] sm:$0xf0] }
  0xeb   :  { %516 = vst [vmem:[#allocation5 + $0x70] sm:$0xff] %v461_v10  ;;  %v435_v16 = vadd.f32 %v434_v15, %v2803_v41  ;;  %v2908_v10 = vld [vmem:[#allocation14 + $0x88] sm:$0xf]  ;;  %v2917_v15 = vld [vmem:[#allocation14 + $0x94] sm:$0xf0] }
  0xec   :  { %517 = vst [vmem:[#allocation5 + $0x78] sm:$0xff] %v490_v13 }
  0xed   :  { %518 = vst [vmem:[#allocation5 + $0x80] sm:$0xff] %v406_v14  ;;  %v2915_v14 = vld [vmem:[#allocation14 + $0x98] sm:$0xf0] }
  0xee   :  { %519 = vst [vmem:[#allocation5 + $0x88] sm:$0xff] %v435_v16  ;;  %v2919_v16 = vld [vmem:[#allocation14 + $0xa4] sm:$0xf] }
  0xef   :  { %3423 = vst [vmem:[#allocation41_spill] sm:$0xff] %v2908_v10 }
  0xf0   :  { %v463_v28 = vpop.f32.mrf.mxu2  ;;  %3424 = vst [vmem:[#allocation42_spill] sm:$0xff] %v2910_v11 }
  0xf1   :  { %v464_v32 = vadd.f32 %v463_v28, %v2807_v46  ;;  %v492_v33 = vpop.f32.mrf.mxu3  ;;  %v407_v34 = vpop.f32.mrf.mxu0  ;;  %3425 = vst [vmem:[#allocation43_spill] sm:$0xff] %v2912_v12  ;;  %v2921_v28 = vld [vmem:[#allocation14 + $0xa0] sm:$0xf] }
  0xf2   :  { %v493_v38 = vadd.f32 %v492_v33, %v2809_v47  ;;  %v408_v39 = vadd.f32 %v407_v34, %v2801_v40  ;;  %v436_v42 = vpop.f32.mrf.mxu1  ;;  %3426 = vst [vmem:[#allocation44_spill] sm:$0xff] %v2915_v14  ;;  %v2925_v33 = vld [vmem:[#allocation14 + $0xa8] sm:$0xf]  ;;  %v2927_v34 = vld [vmem:[#allocation14 + $0xb0] sm:$0xf0] }
  0xf3   :  { %520 = vst [vmem:[#allocation5 + $0x90] sm:$0xff] %v464_v32  ;;  %v437_v48 = vadd.f32 %v436_v42, %v2803_v41  ;;  %v2923_v32 = vld [vmem:[#allocation14 + $0xac] sm:$0xf]  ;;  %v2933_v42 = vld [vmem:[#allocation14 + $0xb4] sm:$0xf0] }
  0xf4   :  { %521 = vst [vmem:[#allocation5 + $0x98] sm:$0xff] %v493_v38  ;;  %v2929_v38 = vld [vmem:[#allocation14 + $0xac] sm:$0xf0] }
  0xf5   :  { %522 = vst [vmem:[#allocation5 + $0xa0] sm:$0xff] %v408_v39  ;;  %v2931_v39 = vld [vmem:[#allocation14 + $0xb8] sm:$0xf0] }
  0xf6   :  { %523 = vst [vmem:[#allocation5 + $0xa8] sm:$0xff] %v437_v48  ;;  %v2935_v48 = vld [vmem:[#allocation14 + $0xc4] sm:$0xf] }
  0xf7   :  { %3427 = vst [vmem:[#allocation45_spill] sm:$0xff] %v2917_v15 }
  0xf8   :  { %v465_v60 = vpop.f32.mrf.mxu2  ;;  %3428 = vst [vmem:[#allocation46_spill] sm:$0xff] %v2919_v16 }
  0xf9   :  { %v466_v0 = vadd.f32 %v465_v60, %v2807_v46  ;;  %v494_v2 = vpop.f32.mrf.mxu3  ;;  %v410_v3 = vpop.f32.mrf.mxu0 }
  0xfa   :  { %v495_v7 = vadd.f32 %v494_v2, %v2809_v47  ;;  %v411_v8 = vadd.f32 %v410_v3, %v2801_v40  ;;  %v439_v9 = vpop.f32.mrf.mxu1  ;;  %v2939_v2 = vld [vmem:[#allocation14 + $0xcc] sm:$0xf]  ;;  %v2941_v3 = vld [vmem:[#allocation14 + $0xc8] sm:$0xf] }
  0xfb   :  { %524 = vst [vmem:[#allocation5 + $0xb0] sm:$0xff] %v466_v0  ;;  %v440_v13 = vadd.f32 %v439_v9, %v2803_v41  ;;  %v2937_v0 = vld [vmem:[#allocation14 + $0xc0] sm:$0xf] }
  0xfc   :  { %525 = vst [vmem:[#allocation5 + $0xb8] sm:$0xff] %v495_v7 }
  0xfd   :  { %526 = vst [vmem:[#allocation5 + $0xc0] sm:$0xff] %v411_v8 }
  0xfe   :  { %527 = vst [vmem:[#allocation5 + $0xc8] sm:$0xff] %v440_v13  ;;  %v2944_v13 = vld [vmem:[#allocation14 + $0xd0] sm:$0xf0] }
  0xff   :  { %3429 = vst [vmem:[#allocation47_spill] sm:$0xff] %v2937_v0 }
 0x100   :  { %v468_v60 = vpop.f32.mrf.mxu2  ;;  %3430 = vst [vmem:[#allocation48_spill] sm:$0xff] %v2939_v2 }
 0x101   :  { %3431 = vst [vmem:[#allocation49_spill] sm:$0xff] %v2941_v3  ;;  %v469_v7 = vadd.f32 %v468_v60, %v2807_v46  ;;  %v497_v8 = vpop.f32.mrf.mxu3  ;;  %v412_v9 = vpop.f32.mrf.mxu0 }
 0x102   :  { %3432 = vst [vmem:[#allocation50_spill] sm:$0xff] %v2944_v13  ;;  %v498_v21 = vadd.f32 %v497_v8, %v2809_v47  ;;  %v413_v20 = vadd.f32 %v412_v9, %v2801_v40  ;;  %v441_v25 = vpop.f32.mrf.mxu1  ;;  %v2965_v8 = vld [vmem:[#allocation14 + $0xec] sm:$0xf0]  ;;  %v2967_v40 = vld [vmem:[#allocation14 + $0xf8] sm:$0xf0] }
 0x103   :  { %528 = vst [vmem:[#allocation5 + $0xd0] sm:$0xff] %v469_v7  ;;  %v442_v60 = vadd.f32 %v441_v25, %v2803_v41  ;;  %v2969_v9 = vld [vmem:[#allocation14 + $0xf4] sm:$0xf0] }
 0x104   :  { %529 = vst [vmem:[#allocation5 + $0xd8] sm:$0xff] %v498_v21  ;;  %v3436_v21 = vmov %v2837_v22 }
 0x105   :  { %3434 = vst [vmem:[#allocation52_spill] sm:$0xff] %v2965_v8 }
 0x106   :  { %530 = vst [vmem:[#allocation5 + $0xe0] sm:$0xff] %v413_v20  ;;  %v3437_v20 = vmov %v2831_v19 }
 0x107   :  { %3435 = vst [vmem:[#allocation53_spill] sm:$0xff] %v2969_v9 }
 0x108   :  { %531 = vst [vmem:[#allocation5 + $0xe8] sm:$0xff] %v442_v60  ;;  %v470_v30 = vpop.f32.mrf.mxu2  ;;  %1618 = sbr.rel (%p1641_p2) target bundleno = 475 (0x1db), region = 103 }
 0x109   :  { %v471_v7 = vadd.f32 %v470_v30, %v2807_v46  ;;  %v499_v37 = vpop.f32.mrf.mxu3 }
 0x10a   :  { %v500_v41 = vadd.f32 %v499_v37, %v2809_v47 }
 0x10b   :  { %532 = vst [vmem:[#allocation5 + $0xf0] sm:$0xff] %v471_v7 }
 0x10c   :  { %533 = vst [vmem:[#allocation5 + $0xf8] sm:$0xff] %v500_v41 }
 0x10d LB: > { %v3438_v8 = vld [vmem:[#allocation52_spill] sm:$0xff]  ;;  %v1909_v47 = vor.u32 %v2954_v23, %v2963_v31  ;;  %v1917_v25 = vor.u32 %v2959_v18, %v2967_v40  ;;  %v3440_v0 = vld [vmem:[#allocation47_spill] sm:$0xff]  ;;  %v3442_v13 = vld [vmem:[#allocation50_spill] sm:$0xff]  ;;  %v1873_v21 = vor.u32 %v2929_v38, %v2921_v28  ;;  %s1787_s23 = sshll.u32 %s2672_s5, 3  ;;  %s2672_s5 = sphi %s2987_s5, %s571_s5   ;;  %v2668_v19 = vphi %v2831_v19, %v3470_v19   ;;  %v2664_v22 = vphi %v2837_v22, %v3469_v22  }
 0x10e   : > { %v1905_v46 = vor.u32 %v3438_v8, %v2956_v24  ;;  %v3439_v9 = vld [vmem:[#allocation53_spill] sm:$0xff]  ;;  %v3441_v1 = vld [vmem:[#allocation51_spill] sm:$0xff]  ;;  %v1893_v60 = vor.u32 %v2935_v48, %v3442_v13  ;;  %v3443_v2 = vld [vmem:[#allocation48_spill] sm:$0xff]  ;;  %s577_s24 = sshra.s32 %s1787_s23, 3  ;;  %s871_s27 = scalar_lea.vmem [#allocation4], %s1787_s23 }
 0x10f   : > { %v1913_v30 = vor.u32 %v3439_v9, %v2961_v43  ;;  %760 = vmatpush.bf16.msra.mxu1 %v1909_v47  ;;  %v1889_v37 = vor.u32 %v3441_v1, %v3440_v0  ;;  %786 = vmatpush.bf16.msra.mxu3 %v1917_v25  ;;  %v1901_v7 = vor.u32 %v3443_v2, %v2948_v26  ;;  %v3444_v3 = vld [vmem:[#allocation49_spill] sm:$0xff]  ;;  %v3445_v16 = vld [vmem:[#allocation46_spill] sm:$0xff]  ;;  %v3446_v5 = vld [vmem:[#allocation39_spill] sm:$0xff]  ;;  %s2254_s25 = sshll.u32 %s577_s24, 5 }
 0x110   : > { %747 = vmatpush.bf16.msra.mxu0 %v1905_v46  ;;  %v1897_v41 = vor.u32 %v2952_v17, %v3444_v3  ;;  %v1877_v20 = vor.u32 %v3445_v16, %v2927_v34  ;;  %v1885_v46 = vor.u32 %v2923_v32, %v2931_v39  ;;  %v1881_v47 = vor.u32 %v2933_v42, %v2925_v33  ;;  %v3447_v12 = vld [vmem:[#allocation43_spill] sm:$0xff]  ;;  %v3448_v11 = vld [vmem:[#allocation42_spill] sm:$0xff]  ;;  %v3450_v14 = vld [vmem:[#allocation44_spill] sm:$0xff]  ;;  %s581_s26 = scalar_lea.vmem [#allocation5], %s2254_s25 }
 0x111   : > { %773 = vmatpush.bf16.msra.mxu2 %v1913_v30  ;;  %v1857_v25 = vor.u32 %v3447_v12, %v3446_v5  ;;  %v3449_v4 = vld [vmem:[#allocation38_spill] sm:$0xff]  ;;  %v3451_v6 = vld [vmem:[#allocation40_spill] sm:$0xff]  ;;  %v3452_v10 = vld [vmem:[#allocation41_spill] sm:$0xff] }
 0x112   : > { %v1861_v30 = vor.u32 %v3449_v4, %v3448_v11  ;;  %v3453_v15 = vld [vmem:[#allocation45_spill] sm:$0xff]  ;;  %v3459_v3 = vld [vmem:[#allocation31_spill] sm:$0xff]  ;;  %v3461_v4 = vld [vmem:[#allocation26_spill] sm:$0xff] }
 0x113   : > { %761 = vmatpush.bf16.msra.mxu1 %v1893_v60  ;;  %787 = vmatpush.bf16.msra.mxu3 %v1901_v7  ;;  %v1865_v60 = vor.u32 %v3453_v15, %v3452_v10  ;;  %v1841_v7 = vor.u32 %v2893_v61, %v2885_v56  ;;  %v3457_v1 = vld [vmem:[#allocation37_spill] sm:$0xff] }
 0x114   : > { %748 = vmatpush.bf16.msra.mxu0 %v1889_v37  ;;  %v1869_v37 = vor.u32 %v3451_v6, %v3450_v14  ;;  %v3462_v6 = vld [vmem:[#allocation32_spill] sm:$0xff] }
 0x115   : > { %774 = vmatpush.bf16.msra.mxu2 %v1897_v41  ;;  %v1845_v41 = vor.u32 %v2883_v55, %v2891_v59 }
 0x117   : > { %762 = vmatpush.bf16.msra.mxu1 %v1877_v20  ;;  %788 = vmatpush.bf16.msra.mxu3 %v1885_v46  ;;  %v1849_v20 = vor.u32 %v2897_v63, %v2889_v58  ;;  %v1825_v46 = vor.u32 %v2877_v52, %v2868_v45 }
 0x118   : > { %749 = vmatpush.bf16.msra.mxu0 %v1873_v21  ;;  %v1853_v21 = vor.u32 %v2887_v57, %v2895_v62 }
 0x119   : > { %775 = vmatpush.bf16.msra.mxu2 %v1881_v47  ;;  %v1829_v47 = vor.u32 %v2866_v44, %v2875_v51 }
 0x11b   : > { %763 = vmatpush.bf16.msra.mxu1 %v1861_v30  ;;  %789 = vmatpush.bf16.msra.mxu3 %v1869_v37  ;;  %v1833_v30 = vor.u32 %v2881_v54, %v2873_v50  ;;  %v1809_v37 = vor.u32 %v2858_v36, %v2849_v29 }
 0x11c   : > { %750 = vmatpush.bf16.msra.mxu0 %v1857_v25  ;;  %v1837_v25 = vor.u32 %v2871_v49, %v2879_v53 }
 0x11d   : > { %776 = vmatpush.bf16.msra.mxu2 %v1865_v60  ;;  %v1813_v60 = vor.u32 %v2847_v27, %v2856_v35 }
 0x11f   : > { %764 = vmatpush.bf16.msra.mxu1 %v1845_v41  ;;  %790 = vmatpush.bf16.msra.mxu3 %v1853_v21  ;;  %v3455_v41 = vld [vmem:[#allocation34_spill] sm:$0xff]  ;;  %v3456_v21 = vld [vmem:[#allocation35_spill] sm:$0xff] }
 0x120   : > { %751 = vmatpush.bf16.msra.mxu0 %v1841_v7  ;;  %v3454_v7 = vld [vmem:[#allocation36_spill] sm:$0xff]  ;;  %v1817_v2 = vor.u32 %v3457_v1, %v3456_v21  ;;  %v586_v1 = vpack.c.bf16 %v2668_v19, %v2668_v19 }
 0x121   : > { %777 = vmatpush.bf16.msra.mxu2 %v1849_v20  ;;  %v1821_v0 = vor.u32 %v3455_v41, %v3454_v7  ;;  %v3458_v20 = vld [vmem:[#allocation27_spill] sm:$0xff]  ;;  %v3464_v7 = vld [vmem:[#allocation29_spill] sm:$0xff] }
 0x123   : > { %765 = vmatpush.bf16.msra.mxu1 %v1829_v47  ;;  %791 = vmatpush.bf16.msra.mxu3 %v1837_v25  ;;  %v3460_v47 = vld [vmem:[#allocation30_spill] sm:$0xff]  ;;  %v3463_v25 = vld [vmem:[#allocation28_spill] sm:$0xff] }
 0x124   : > { %752 = vmatpush.bf16.msra.mxu0 %v1825_v46  ;;  %v1793_v46 = vor.u32 %v3459_v3, %v3458_v20  ;;  %v1797_v5 = vor.u32 %v3461_v4, %v3460_v47  ;;  %v1805_v8 = vor.u32 %v3463_v25, %v3462_v6  ;;  %v582_v4 = vld [vmem:[%s581_s26] sm:$0xff]  ;;  %v583_v6 = vld [vmem:[%s581_s26 + $0x8] sm:$0xff] }
 0x125   : > { %778 = vmatpush.bf16.msra.mxu2 %v1833_v30  ;;  %v3465_v30 = vld [vmem:[#allocation33_spill] sm:$0xff] }
 0x126   : > { %v1801_v41 = vor.u32 %v3465_v30, %v3464_v7 }
 0x127   : > { %766 = vmatpush.bf16.msra.mxu1 %v1813_v60  ;;  %792 = vmatpush.bf16.msra.mxu3 %v1821_v0 }
 0x128   : > { %753 = vmatpush.bf16.msra.mxu0 %v1809_v37 }
 0x129   : > { %779 = vmatpush.bf16.msra.mxu2 %v1817_v2 }
 0x12b   : > { %767 = vmatpush.bf16.msra.mxu1 %v1797_v5  ;;  %793 = vmatpush.bf16.msra.mxu3 %v1805_v8  ;;  %v585_v5 = vld [vmem:[%s581_s26 + $0x18] sm:$0xff] }
 0x12c   : > { %754 = vmatpush.bf16.msra.mxu0 %v1793_v46 }
 0x12d   : > { %780 = vmatpush.bf16.msra.mxu2 %v1801_v41 }
 0x12e   : > { %768 = vmatmul.bf16.vlgmr.msra.gmra.mxu1 %v586_v1  ;;  %794 = vmatmul.bf16.vlgmr.msra.gmra.mxu3 %v586_v1 }
 0x12f   : > { %755 = vmatmul.bf16.vlgmr.msra.gmra.mxu0 %v586_v1 }
 0x130   : > { %781 = vmatmul.bf16.vlgmr.msra.gmra.mxu2 %v586_v1 }
 0x1ab   : > { %v769_v2 = vpop.f32.mrf.mxu1 }
 0x1ac   : > { %v756_v0 = vpop.f32.mrf.mxu0  ;;  %v800_v37 = vadd.f32 %v769_v2, %v583_v6 }
 0x1ad   : > { %v799_v3 = vadd.f32 %v756_v0, %v582_v4  ;;  %v584_v4 = vld [vmem:[%s581_s26 + $0x10] sm:$0xff] }
 0x1ae   : > { %v1919_v21 = vmul.f32 -1.442695, %v800_v37 }
 0x1af   : > { %v1918_v60 = vmul.f32 -1.442695, %v799_v3 }
 0x1b1   : > { %2412 = vpow2.f32 %v1918_v60  ;;  %v795_v8 = vpop.f32.mrf.mxu3 }
 0x1b2   : > { %2414 = vpow2.f32 %v1919_v21  ;;  %v802_v46 = vadd.f32 %v795_v8, %v585_v5 }
 0x1b3   : > { %v782_v20 = vpop.f32.mrf.mxu2  ;;  %v771_v25 = vpop.f32.mrf.mxu1 }
 0x1b4   : > { %v758_v47 = vpop.f32.mrf.mxu0  ;;  %v1920_v7 = vmul.f32 -1.442695, %v802_v46  ;;  %v801_v3 = vadd.f32 %v782_v20, %v584_v4  ;;  %v867_v20 = vstv %s2672_s5  ;;  %s571_s5 = sadd.s32 1, %s2672_s5  }
 0x1b5   : > { %p570_p3 = scmp.ge.s32.totalorder %s571_s5, %s3541_s0 }
 0x1b6   : > { %2416 = vpow2.f32 %v1920_v7 }
 0x1b7   : > { %v2413_v30 = vpop.eup %2412 }
 0x1b8   : > { %v2415_v41 = vpop.eup %2414  ;;  %v806_v1 = vadd.f32 1.0, %v2413_v30 }
 0x1b9   : > { %v825_v9 = vadd.f32 1.0, %v2415_v41  ;;  %v797_v6 = vpop.f32.mrf.mxu3 }
 0x1ba   : > { %2418 = vrcp.f32 %v806_v1  ;;  %v818_v25 = vand.u32 2147483648, %v806_v1  ;;  %v816_v41 = vand.u32 2147483647, %v806_v1  ;;  %vm812_vm2 = vweird.f32 %v806_v1 }
 0x1bb   : > { %2420 = vrcp.f32 %v825_v9  ;;  %v784_v0 = vpop.f32.mrf.mxu2  ;;  %v837_v7 = vand.u32 2147483648, %v825_v9  ;;  %v835_v6 = vand.u32 2147483647, %v825_v9  ;;  %vm831_vm3 = vweird.f32 %v825_v9 }
 0x1bc   : > { %v2417_v2 = vpop.eup %2416  ;;  %v819_v12 = vor.u32 1.1754944e-38, %v818_v25  ;;  %vm817_vm6 = vcmp.eq.f32.partialorder %v816_v41, 8.507059e+37 }
 0x1bd   : > { %v845_v37 = vadd.f32 1.0, %v2417_v2  ;;  %vm836_vm7 = vcmp.eq.f32.partialorder %v835_v6, 8.507059e+37 }
 0x1bf   : > { %2422 = vrcp.f32 %v845_v37  ;;  %vm851_vm10 = vweird.f32 %v845_v37 }
 0x1c0   : > { %v2419_v60 = vpop.eup %2418  ;;  %2424 = vtanh.f32 %v801_v3 }
 0x1c1   : > { %v2421_v21 = vpop.eup %2420  ;;  %v808_v5 = vmul.f32 %v2419_v60, %v806_v1  ;;  %vm813_vm0 = vweird.f32 %v2419_v60  ;;  %v3466_v1 = vld [vmem:[#allocation25_spill] sm:$0xff] }
 0x1c2   : > { %v827_v8 = vmul.f32 %v2421_v21, %v825_v9  ;;  %vm832_vm1 = vweird.f32 %v2421_v21  ;;  %vm814_vm4 = vmor %vm812_vm2, %vm813_vm0  ;;  %vm3070_vm8 = vcmp.lt.s32.totalorder %v867_v20, %v3466_v1 }
 0x1c3   : > { %v809_v46 = vsub.f32 1.0, %v808_v5  ;;  %vm833_vm5 = vmor %vm831_vm3, %vm832_vm1  ;;  %v838_v5 = vor.u32 1.1754944e-38, %v837_v7 }
 0x1c4   : > { %v828_v47 = vsub.f32 1.0, %v827_v8 }
 0x1c5   : > { %v810_v30 = vmul.f32 %v2419_v60, %v809_v46  ;;  %v2423_v0 = vpop.eup %2422 }
 0x1c6   : > { %v829_v10 = vmul.f32 %v2421_v21, %v828_v47  ;;  %v2425_v2 = vpop.eup %2424  ;;  %v847_v11 = vmul.f32 %v2423_v0, %v845_v37  ;;  %vm852_vm9 = vweird.f32 %v2423_v0 }
 0x1c7   : > { %v811_v4 = vadd.f32 %v2419_v60, %v810_v30  ;;  %vm853_vm11 = vmor %vm851_vm10, %vm852_vm9 }
 0x1c8   : > { %v830_v3 = vadd.f32 %v2421_v21, %v829_v10  ;;  %v848_v46 = vsub.f32 1.0, %v847_v11 }
 0x1c9   : > { %v815_v8 = vsel %vm814_vm4, %v2419_v60, %v811_v4  ;;  %v857_v60 = vand.u32 2147483648, %v845_v37 }
 0x1ca   : > { %v820_v13 = vsel %vm817_vm6, %v819_v12, %v815_v8  ;;  %v834_v14 = vsel %vm833_vm5, %v2421_v21, %v830_v3  ;;  %v849_v16 = vmul.f32 %v2423_v0, %v848_v46  ;;  %v855_v12 = vand.u32 2147483647, %v845_v37 }
 0x1cb   : > { %v839_v47 = vsel %vm836_vm7, %v838_v5, %v834_v14  ;;  %v862_v15 = vmul.f32 %v2425_v2, %v820_v13  ;;  %v858_v13 = vor.u32 1.1754944e-38, %v857_v60 }
 0x1cc   : > { %v861_v30 = vmul.f32 %v2664_v22, %v839_v47  ;;  %v850_v10 = vadd.f32 %v2423_v0, %v849_v16  ;;  %vm856_vm12 = vcmp.eq.f32.partialorder %v855_v12, 8.507059e+37 }
 0x1ce   : > { %v863_v25 = vadd.f32 %v862_v15, %v861_v30  ;;  %v854_v14 = vsel %vm853_vm11, %v2423_v0, %v850_v10 }
 0x1cf   : > { %v859_v7 = vsel %vm856_vm12, %v858_v13, %v854_v14 }
 0x1d0   : > { %2426 = vtanh.f32 %v863_v25  ;;  %v870_v11 = vsel %vm3070_vm8, %v863_v25, %v2664_v22  }
 0x1d1   : > { %v3469_v22 = vmov %v870_v11 }
 0x1d6   : > { %v2427_v21 = vpop.eup %2426  ;;  %573 = sbr.rel (!%p570_p3) target bundleno = 269 (0x10d), region = 109 }
 0x1d7   : > { %v865_v41 = vmul.f32 %v2427_v21, %v859_v7  ;;  %v3471_v21 = vmov (%p570_p3), %v870_v11 }
 0x1d9   : > { %v869_v15 = vsel %vm3070_vm8, %v865_v41, %v2668_v19  }
 0x1da   : > { %872 = vst [vmem:[%s871_s27] sm:$0xff] %v869_v15  ;;  %v3470_v19 = vmov %v869_v15  ;;  %v3472_v20 = vmov (%p570_p3), %v869_v15 }
 0x1db PF:  { %873 = vst [vmem:[#allocation2] sm:$0xff] %v2680_v20  ;;  %v2035_v19 = vld [vmem:[#allocation16 + $0xe0] sm:$0xf]  ;;  %v2285_v16 = vld [vmem:[#allocation16 + $0xec] sm:$0xf0]  ;;  %v2680_v20 = vphi %v3437_v20, %v3472_v20   ;;  %v2676_v21 = vphi %v3436_v21, %v3471_v21  }
 0x1dc   :  { %874 = vst [vmem:[#allocation3 + $0x8] sm:$0xff] %v2676_v21  ;;  %v2036_v37 = vor.u32 %v2285_v16, %v2035_v19  ;;  %v2283_v6 = vld [vmem:[#allocation16 + $0xe4] sm:$0xf]  ;;  %v2037_v0 = vld [vmem:[#allocation16 + $0xf0] sm:$0xf0] }
 0x1dd   :  { %v2040_v4 = vor.u32 %v2283_v6, %v2037_v0  ;;  %v2043_v2 = vld [vmem:[#allocation16 + $0xe8] sm:$0xf]  ;;  %v2286_v3 = vld [vmem:[#allocation16 + $0xf4] sm:$0xf0]  ;;  %v2284_v17 = vld [vmem:[#allocation16 + $0xec] sm:$0xf] }
 0x1de   :  { %1089 = vmatpush.bf16.msra.mxu0 %v2036_v37  ;;  %v2044_v18 = vor.u32 %v2286_v3, %v2043_v2  ;;  %v2045_v22 = vld [vmem:[#allocation16 + $0xf8] sm:$0xf0]  ;;  %v2019_v23 = vld [vmem:[#allocation16 + $0xc0] sm:$0xf]  ;;  %v2281_v24 = vld [vmem:[#allocation16 + $0xcc] sm:$0xf0] }
 0x1df   :  { %1118 = vmatpush.bf16.msra.mxu1 %v2040_v4  ;;  %v2048_v26 = vor.u32 %v2284_v17, %v2045_v22  ;;  %v2020_v27 = vor.u32 %v2281_v24, %v2019_v23  ;;  %v2279_v29 = vld [vmem:[#allocation16 + $0xc4] sm:$0xf]  ;;  %v2021_v31 = vld [vmem:[#allocation16 + $0xd0] sm:$0xf0]  ;;  %v2027_v35 = vld [vmem:[#allocation16 + $0xc8] sm:$0xf] }
 0x1e0   :  { %1147 = vmatpush.bf16.msra.mxu2 %v2044_v18  ;;  %v2024_v36 = vor.u32 %v2279_v29, %v2021_v31  ;;  %v2282_v43 = vld [vmem:[#allocation16 + $0xd4] sm:$0xf0]  ;;  %v2280_v44 = vld [vmem:[#allocation16 + $0xcc] sm:$0xf]  ;;  %v2029_v45 = vld [vmem:[#allocation16 + $0xd8] sm:$0xf0] }
 0x1e1   :  { %1176 = vmatpush.bf16.msra.mxu3 %v2048_v26  ;;  %v2028_v49 = vor.u32 %v2282_v43, %v2027_v35  ;;  %v2032_v50 = vor.u32 %v2280_v44, %v2029_v45  ;;  %v2003_v51 = vld [vmem:[#allocation16 + $0xa0] sm:$0xf]  ;;  %v2277_v52 = vld [vmem:[#allocation16 + $0xac] sm:$0xf0]  ;;  %v2275_v53 = vld [vmem:[#allocation16 + $0xa4] sm:$0xf] }
 0x1e2   :  { %1090 = vmatpush.bf16.msra.mxu0 %v2020_v27  ;;  %v2004_v54 = vor.u32 %v2277_v52, %v2003_v51  ;;  %v2005_v55 = vld [vmem:[#allocation16 + $0xb0] sm:$0xf0]  ;;  %v2011_v56 = vld [vmem:[#allocation16 + $0xa8] sm:$0xf]  ;;  %v2278_v57 = vld [vmem:[#allocation16 + $0xb4] sm:$0xf0] }
 0x1e3   :  { %1119 = vmatpush.bf16.msra.mxu1 %v2024_v36  ;;  %v2008_v58 = vor.u32 %v2275_v53, %v2005_v55  ;;  %v2276_v59 = vld [vmem:[#allocation16 + $0xac] sm:$0xf]  ;;  %v2013_v61 = vld [vmem:[#allocation16 + $0xb8] sm:$0xf0]  ;;  %v1987_v62 = vld [vmem:[#allocation16 + $0x80] sm:$0xf]  ;;  %v2012_v63 = vor.u32 %v2278_v57, %v2011_v56 }
 0x1e4   :  { %1148 = vmatpush.bf16.msra.mxu2 %v2028_v49  ;;  %v2273_v28 = vld [vmem:[#allocation16 + $0x8c] sm:$0xf0]  ;;  %v2271_v32 = vld [vmem:[#allocation16 + $0x84] sm:$0xf]  ;;  %v1989_v33 = vld [vmem:[#allocation16 + $0x90] sm:$0xf0]  ;;  %v2016_v34 = vor.u32 %v2276_v59, %v2013_v61 }
 0x1e5   :  { %1177 = vmatpush.bf16.msra.mxu3 %v2032_v50  ;;  %v1995_v38 = vld [vmem:[#allocation16 + $0x88] sm:$0xf]  ;;  %v2274_v39 = vld [vmem:[#allocation16 + $0x94] sm:$0xf0]  ;;  %v1988_v42 = vor.u32 %v2273_v28, %v1987_v62  ;;  %v2272_v48 = vld [vmem:[#allocation16 + $0x8c] sm:$0xf]  ;;  %v1992_v20 = vor.u32 %v2271_v32, %v1989_v33 }
 0x1e6   :  { %1091 = vmatpush.bf16.msra.mxu0 %v2004_v54  ;;  %v1997_v40 = vld [vmem:[#allocation16 + $0x98] sm:$0xf0]  ;;  %v1971_v5 = vld [vmem:[#allocation16 + $0x60] sm:$0xf]  ;;  %v2269_v8 = vld [vmem:[#allocation16 + $0x6c] sm:$0xf0]  ;;  %v1996_v46 = vor.u32 %v2274_v39, %v1995_v38 }
 0x1e7   :  { %1120 = vmatpush.bf16.msra.mxu1 %v2008_v58  ;;  %v2267_v47 = vld [vmem:[#allocation16 + $0x64] sm:$0xf]  ;;  %v1973_v30 = vld [vmem:[#allocation16 + $0x70] sm:$0xf0]  ;;  %v2000_v1 = vor.u32 %v2272_v48, %v1997_v40  ;;  %v1979_v9 = vld [vmem:[#allocation16 + $0x68] sm:$0xf]  ;;  %v1972_v10 = vor.u32 %v2269_v8, %v1971_v5 }
 0x1e8   :  { %1149 = vmatpush.bf16.msra.mxu2 %v2012_v63  ;;  %v2270_v25 = vld [vmem:[#allocation16 + $0x74] sm:$0xf0]  ;;  %v2268_v60 = vld [vmem:[#allocation16 + $0x6c] sm:$0xf]  ;;  %v1981_v11 = vld [vmem:[#allocation16 + $0x78] sm:$0xf0]  ;;  %v1976_v12 = vor.u32 %v2267_v47, %v1973_v30 }
 0x1e9   :  { %1178 = vmatpush.bf16.msra.mxu3 %v2016_v34  ;;  %v1955_v14 = vld [vmem:[#allocation16 + $0x40] sm:$0xf]  ;;  %v2265_v13 = vld [vmem:[#allocation16 + $0x4c] sm:$0xf0]  ;;  %v1980_v21 = vor.u32 %v2270_v25, %v1979_v9  ;;  %v2263_v7 = vld [vmem:[#allocation16 + $0x44] sm:$0xf]  ;;  %v1984_v15 = vor.u32 %v2268_v60, %v1981_v11 }
 0x1ea   :  { %1092 = vmatpush.bf16.msra.mxu0 %v1988_v42  ;;  %v1957_v41 = vld [vmem:[#allocation16 + $0x50] sm:$0xf0]  ;;  %v1963_v19 = vld [vmem:[#allocation16 + $0x48] sm:$0xf]  ;;  %v2266_v16 = vld [vmem:[#allocation16 + $0x54] sm:$0xf0]  ;;  %v1956_v37 = vor.u32 %v2265_v13, %v1955_v14 }
 0x1eb   :  { %1121 = vmatpush.bf16.msra.mxu1 %v1992_v20  ;;  %v2264_v6 = vld [vmem:[#allocation16 + $0x4c] sm:$0xf]  ;;  %v1965_v0 = vld [vmem:[#allocation16 + $0x58] sm:$0xf0]  ;;  %v1960_v4 = vor.u32 %v2263_v7, %v1957_v41  ;;  %v1939_v2 = vld [vmem:[#allocation16 + $0x20] sm:$0xf]  ;;  %v1964_v17 = vor.u32 %v2266_v16, %v1963_v19 }
 0x1ec   :  { %1150 = vmatpush.bf16.msra.mxu2 %v1996_v46  ;;  %v2261_v3 = vld [vmem:[#allocation16 + $0x2c] sm:$0xf0]  ;;  %v2259_v18 = vld [vmem:[#allocation16 + $0x24] sm:$0xf]  ;;  %v1941_v22 = vld [vmem:[#allocation16 + $0x30] sm:$0xf0]  ;;  %v1968_v23 = vor.u32 %v2264_v6, %v1965_v0 }
 0x1ed   :  { %1179 = vmatpush.bf16.msra.mxu3 %v2000_v1  ;;  %v1947_v24 = vld [vmem:[#allocation16 + $0x28] sm:$0xf]  ;;  %v2262_v26 = vld [vmem:[#allocation16 + $0x34] sm:$0xf0]  ;;  %v1940_v27 = vor.u32 %v2261_v3, %v1939_v2  ;;  %v2260_v29 = vld [vmem:[#allocation16 + $0x2c] sm:$0xf]  ;;  %v1944_v35 = vor.u32 %v2259_v18, %v1941_v22 }
 0x1ee   :  { %1093 = vmatpush.bf16.msra.mxu0 %v1972_v10  ;;  %v1949_v31 = vld [vmem:[#allocation16 + $0x38] sm:$0xf0]  ;;  %v1923_v36 = vld [vmem:[#allocation16] sm:$0xf]  ;;  %v2257_v43 = vld [vmem:[#allocation16 + $0xc] sm:$0xf0]  ;;  %v1948_v44 = vor.u32 %v2262_v26, %v1947_v24 }
 0x1ef   :  { %1122 = vmatpush.bf16.msra.mxu1 %v1976_v12  ;;  %v2255_v45 = vld [vmem:[#allocation16 + $0x4] sm:$0xf]  ;;  %v1925_v49 = vld [vmem:[#allocation16 + $0x10] sm:$0xf0]  ;;  %v1952_v50 = vor.u32 %v2260_v29, %v1949_v31  ;;  %v1931_v51 = vld [vmem:[#allocation16 + $0x8] sm:$0xf]  ;;  %v1924_v54 = vor.u32 %v2257_v43, %v1923_v36 }
 0x1f0   :  { %1151 = vmatpush.bf16.msra.mxu2 %v1980_v21  ;;  %v2258_v52 = vld [vmem:[#allocation16 + $0x14] sm:$0xf0]  ;;  %v2256_v53 = vld [vmem:[#allocation16 + $0xc] sm:$0xf]  ;;  %v1933_v55 = vld [vmem:[#allocation16 + $0x18] sm:$0xf0]  ;;  %v1928_v58 = vor.u32 %v2255_v45, %v1925_v49 }
 0x1f1   :  { %1180 = vmatpush.bf16.msra.mxu3 %v1984_v15  ;;  %v875_v56 = vld [vmem:[#allocation4] sm:$0xff]  ;;  %v876_v57 = vld [vmem:[#allocation4 + $0x8] sm:$0xff]  ;;  %v1932_v59 = vor.u32 %v2258_v52, %v1931_v51  ;;  %v1936_v61 = vor.u32 %v2256_v53, %v1933_v55  ;;  %v877_v63 = vld [vmem:[#allocation4 + $0x10] sm:$0xff] }
 0x1f2   :  { %1094 = vmatpush.bf16.msra.mxu0 %v1956_v37  ;;  %v883_v62 = vpack.c.bf16 %v876_v57, %v875_v56  ;;  %v878_v28 = vld [vmem:[#allocation4 + $0x18] sm:$0xff]  ;;  %v879_v33 = vld [vmem:[#allocation4 + $0x20] sm:$0xff]  ;;  %v880_v34 = vld [vmem:[#allocation4 + $0x28] sm:$0xff] }
 0x1f3   :  { %1123 = vmatpush.bf16.msra.mxu1 %v1960_v4  ;;  %v884_v32 = vpack.c.bf16 %v878_v28, %v877_v63  ;;  %v885_v38 = vpack.c.bf16 %v880_v34, %v879_v33  ;;  %v881_v39 = vld [vmem:[#allocation4 + $0x30] sm:$0xff]  ;;  %v882_v42 = vld [vmem:[#allocation4 + $0x38] sm:$0xff]  ;;  %v919_v40 = vld [vmem:[%s3405_s8] sm:$0xf]  ;;  %s3285_s8 = smov (!%p1641_p2), 0  }
 0x1f4   :  { %1152 = vmatpush.bf16.msra.mxu2 %v1964_v17  ;;  %v886_v48 = vpack.c.bf16 %v882_v42, %v881_v39  ;;  %v3099_v20 = vperm.slane %v919_v40, 0  ;;  %v3101_v5 = vperm.slane %v919_v40, 1  ;;  %v3105_v1 = vperm.slane %v919_v40, 2  ;;  %v3125_v45 = vld [vmem:[#allocation17 + $0x4] sm:$0xf]  ;;  %v3135_v53 = vld [vmem:[#allocation3] sm:$0xff]  }
 0x1f5   :  { %1181 = vmatpush.bf16.msra.mxu3 %v1968_v23  ;;  %v3107_v9 = vperm.slane %v919_v40, 3  ;;  %3473 = vst [vmem:[#allocation26_spill] sm:$0xff] %v3125_v45  ;;  %v3127_v49 = vld [vmem:[#allocation17] sm:$0xf]  ;;  %v3131_v51 = vld [vmem:[#allocation17 + $0xc] sm:$0xf] }
 0x1f6   :  { %1095 = vmatpush.bf16.msra.mxu0 %v1940_v27  ;;  %3474 = vst [vmem:[#allocation27_spill] sm:$0xff] %v3127_v49  ;;  %v3133_v52 = vld [vmem:[#allocation17 + $0x8] sm:$0xf]  ;;  %v3139_v55 = vld [vmem:[#allocation17 + $0xc] sm:$0xf0] }
 0x1f7   :  { %1124 = vmatpush.bf16.msra.mxu1 %v1944_v35  ;;  %3475 = vst [vmem:[#allocation28_spill] sm:$0xff] %v3131_v51  ;;  %v3141_v56 = vld [vmem:[#allocation17 + $0x18] sm:$0xf0]  ;;  %v3143_v57 = vld [vmem:[#allocation17 + $0x14] sm:$0xf0] }
 0x1f8   :  { %1153 = vmatpush.bf16.msra.mxu2 %v1948_v44  ;;  %3476 = vst [vmem:[#allocation29_spill] sm:$0xff] %v3133_v52  ;;  %v3149_v63 = vld [vmem:[#allocation17 + $0x2c] sm:$0xf]  ;;  %v3151_v28 = vld [vmem:[#allocation17 + $0x28] sm:$0xf] }
 0x1f9   :  { %1182 = vmatpush.bf16.msra.mxu3 %v1952_v50  ;;  %v3129_v50 = vld [vmem:[#allocation2 + $0x8] sm:$0xff]   ;;  %3478 = vst [vmem:[#allocation31_spill] sm:$0xff] %v3139_v55  ;;  %v3155_v39 = vld [vmem:[#allocation17 + $0x30] sm:$0xf0]  ;;  %v3157_v42 = vld [vmem:[#allocation17 + $0x2c] sm:$0xf0] }
 0x1fa   :  { %1096 = vmatpush.bf16.msra.mxu0 %v1924_v54  ;;  %v3137_v54 = vld [vmem:[#allocation17 + $0x10] sm:$0xf0]  ;;  %3479 = vst [vmem:[#allocation32_spill] sm:$0xff] %v3141_v56  ;;  %v3245_v52 = vld [vmem:[#allocation17 + $0xcc] sm:$0xf0] }
 0x1fb   :  { %1125 = vmatpush.bf16.msra.mxu1 %v1928_v58  ;;  %3477 = vst [vmem:[#allocation30_spill] sm:$0xff] %v3137_v54  ;;  %v3145_v58 = vld [vmem:[#allocation17 + $0x24] sm:$0xf]  ;;  %v3247_v51 = vld [vmem:[#allocation17 + $0xd8] sm:$0xf0] }
 0x1fc   :  { %1154 = vmatpush.bf16.msra.mxu2 %v1932_v59  ;;  %3480 = vst [vmem:[#allocation33_spill] sm:$0xff] %v3143_v57  ;;  %v3243_v57 = vld [vmem:[#allocation17 + $0xd0] sm:$0xf0]  ;;  %v3251_v54 = vld [vmem:[#allocation17 + $0xd4] sm:$0xf0] }
 0x1fd   :  { %1183 = vmatpush.bf16.msra.mxu3 %v1936_v61  ;;  %1097 = vmatmul.bf16.vlgmr.msra.gmra.mxu0 %v883_v62  ;;  %3481 = vst [vmem:[#allocation34_spill] sm:$0xff] %v3149_v63  ;;  %v3253_v55 = vld [vmem:[#allocation17 + $0xe4] sm:$0xf]  ;;  %v3255_v49 = vld [vmem:[#allocation17 + $0xe0] sm:$0xf] }
 0x1fe   :  { %1126 = vmatmul.bf16.vlgmr.msra.gmra.mxu1 %v883_v62  ;;  %3482 = vst [vmem:[#allocation35_spill] sm:$0xff] %v3151_v28 }
 0x1ff   :  { %1155 = vmatmul.bf16.vlgmr.msra.gmra.mxu2 %v883_v62 }
 0x200   :  { %1184 = vmatmul.bf16.vlgmr.msra.gmra.mxu3 %v883_v62  ;;  %v3147_v62 = vld [vmem:[#allocation17 + $0x20] sm:$0xf] }
 0x20d   :  { %1102 = vmatmul.bf16.gmra.mxu0 %v884_v32 }
 0x20e   :  { %1131 = vmatmul.bf16.gmra.mxu1 %v884_v32 }
 0x20f   :  { %1160 = vmatmul.bf16.gmra.mxu2 %v884_v32 }
 0x210   :  { %1189 = vmatmul.bf16.gmra.mxu3 %v884_v32 }
 0x21d   :  { %1107 = vmatmul.bf16.gmra.mxu0 %v885_v38 }
 0x21e   :  { %1136 = vmatmul.bf16.gmra.mxu1 %v885_v38 }
 0x21f   :  { %1165 = vmatmul.bf16.gmra.mxu2 %v885_v38 }
 0x220   :  { %1194 = vmatmul.bf16.gmra.mxu3 %v885_v38 }
 0x22d   :  { %1112 = vmatmul.bf16.gmra.mxu0 %v886_v48 }
 0x22e   :  { %1141 = vmatmul.bf16.gmra.mxu1 %v886_v48 }
 0x22f   :  { %1170 = vmatmul.bf16.gmra.mxu2 %v886_v48 }
 0x230   :  { %1199 = vmatmul.bf16.gmra.mxu3 %v886_v48  ;;  %v3159_v48 = vld [vmem:[#allocation17 + $0x38] sm:$0xf0] }
 0x27a   :  { %v1098_v8 = vpop.f32.mrf.mxu0 }
 0x27b   :  { %v1099_v46 = vadd.f32 %v1098_v8, %v3099_v20  ;;  %v1127_v47 = vpop.f32.mrf.mxu1 }
 0x27c   :  { %v1128_v30 = vadd.f32 %v1127_v47, %v3101_v5  ;;  %v3165_v47 = vld [vmem:[#allocation17 + $0x44] sm:$0xf] }
 0x27d   :  { %1205 = vst [vmem:[#allocation5] sm:$0xff] %v1099_v46  ;;  %v3163_v46 = vld [vmem:[#allocation17 + $0x34] sm:$0xf0] }
 0x27e   :  { %1206 = vst [vmem:[#allocation5 + $0x8] sm:$0xff] %v1128_v30  ;;  %v3167_v30 = vld [vmem:[#allocation17 + $0x40] sm:$0xf] }
 0x27f   :  { %3483 = vst [vmem:[#allocation36_spill] sm:$0xff] %v3163_v46  ;;  %v3263_v46 = vld [vmem:[#allocation17 + $0xec] sm:$0xf0] }
 0x282   :  { %v1156_v25 = vpop.f32.mrf.mxu2  ;;  %v1100_v10 = vpop.f32.mrf.mxu0 }
 0x283   :  { %v1157_v60 = vadd.f32 %v1156_v25, %v3105_v1  ;;  %v1185_v11 = vpop.f32.mrf.mxu3  ;;  %v1101_v12 = vadd.f32 %v1100_v10, %v3099_v20  ;;  %v1129_v14 = vpop.f32.mrf.mxu1  ;;  %v3169_v25 = vld [vmem:[#allocation17 + $0x4c] sm:$0xf]  ;;  %v3171_v10 = vld [vmem:[#allocation17 + $0x48] sm:$0xf] }
 0x284   :  { %v1186_v13 = vadd.f32 %v1185_v11, %v3107_v9  ;;  %v1130_v21 = vadd.f32 %v1129_v14, %v3101_v5  ;;  %3484 = vst [vmem:[#allocation37_spill] sm:$0xff] %v3171_v10  ;;  %v3175_v11 = vld [vmem:[#allocation17 + $0x4c] sm:$0xf0]  ;;  %v3179_v14 = vld [vmem:[#allocation17 + $0x54] sm:$0xf0] }
 0x285   :  { %1207 = vst [vmem:[#allocation5 + $0x10] sm:$0xff] %v1157_v60  ;;  %v3173_v60 = vld [vmem:[#allocation17 + $0x50] sm:$0xf0] }
 0x286   :  { %1208 = vst [vmem:[#allocation5 + $0x18] sm:$0xff] %v1186_v13  ;;  %v3181_v13 = vld [vmem:[#allocation17 + $0x64] sm:$0xf] }
 0x287   :  { %1209 = vst [vmem:[#allocation5 + $0x20] sm:$0xff] %v1101_v12  ;;  %v3177_v12 = vld [vmem:[#allocation17 + $0x58] sm:$0xf0] }
 0x288   :  { %1210 = vst [vmem:[#allocation5 + $0x28] sm:$0xff] %v1130_v21  ;;  %v3183_v21 = vld [vmem:[#allocation17 + $0x60] sm:$0xf] }
 0x289   :  { %3485 = vst [vmem:[#allocation38_spill] sm:$0xff] %v3175_v11 }
 0x28a   :  { %v1158_v7 = vpop.f32.mrf.mxu2  ;;  %v1103_v41 = vpop.f32.mrf.mxu0  ;;  %3486 = vst [vmem:[#allocation39_spill] sm:$0xff] %v3177_v12 }
 0x28b   :  { %v1159_v15 = vadd.f32 %v1158_v7, %v3105_v1  ;;  %v1187_v19 = vpop.f32.mrf.mxu3  ;;  %v1104_v16 = vadd.f32 %v1103_v41, %v3099_v20  ;;  %v1132_v37 = vpop.f32.mrf.mxu1  ;;  %3487 = vst [vmem:[#allocation40_spill] sm:$0xff] %v3179_v14  ;;  %v3185_v7 = vld [vmem:[#allocation17 + $0x6c] sm:$0xf]  ;;  %v3187_v41 = vld [vmem:[#allocation17 + $0x68] sm:$0xf] }
 0x28c   :  { %v1188_v6 = vadd.f32 %v1187_v19, %v3107_v9  ;;  %v1133_v0 = vadd.f32 %v1132_v37, %v3101_v5  ;;  %3488 = vst [vmem:[#allocation41_spill] sm:$0xff] %v3181_v13  ;;  %v3191_v37 = vld [vmem:[#allocation17 + $0x6c] sm:$0xf0] }
 0x28d   :  { %1211 = vst [vmem:[#allocation5 + $0x30] sm:$0xff] %v1159_v15  ;;  %v3189_v15 = vld [vmem:[#allocation17 + $0x70] sm:$0xf0] }
 0x28e   :  { %1212 = vst [vmem:[#allocation5 + $0x38] sm:$0xff] %v1188_v6  ;;  %v3193_v6 = vld [vmem:[#allocation17 + $0x78] sm:$0xf0] }
 0x28f   :  { %1213 = vst [vmem:[#allocation5 + $0x40] sm:$0xff] %v1104_v16 }
 0x290   :  { %1214 = vst [vmem:[#allocation5 + $0x48] sm:$0xff] %v1133_v0  ;;  %v3195_v0 = vld [vmem:[#allocation17 + $0x74] sm:$0xf0] }
 0x291   :  { %3489 = vst [vmem:[#allocation42_spill] sm:$0xff] %v3185_v7 }
 0x292   :  { %v1161_v4 = vpop.f32.mrf.mxu2  ;;  %v1105_v2 = vpop.f32.mrf.mxu0  ;;  %3490 = vst [vmem:[#allocation43_spill] sm:$0xff] %v3189_v15 }
 0x293   :  { %v1162_v3 = vadd.f32 %v1161_v4, %v3105_v1  ;;  %v1190_v17 = vpop.f32.mrf.mxu3  ;;  %v1106_v18 = vadd.f32 %v1105_v2, %v3099_v20  ;;  %v1134_v22 = vpop.f32.mrf.mxu1  ;;  %3491 = vst [vmem:[#allocation44_spill] sm:$0xff] %v3193_v6 }
 0x294   :  { %v1191_v23 = vadd.f32 %v1190_v17, %v3107_v9  ;;  %v1135_v24 = vadd.f32 %v1134_v22, %v3101_v5  ;;  %3492 = vst [vmem:[#allocation45_spill] sm:$0xff] %v3195_v0  ;;  %v3201_v22 = vld [vmem:[#allocation17 + $0x80] sm:$0xf] }
 0x295   :  { %1215 = vst [vmem:[#allocation5 + $0x50] sm:$0xff] %v1162_v3 }
 0x296   :  { %1216 = vst [vmem:[#allocation5 + $0x58] sm:$0xff] %v1191_v23  ;;  %v3203_v23 = vld [vmem:[#allocation17 + $0x8c] sm:$0xf] }
 0x297   :  { %1217 = vst [vmem:[#allocation5 + $0x60] sm:$0xff] %v1106_v18  ;;  %v3199_v18 = vld [vmem:[#allocation17 + $0x84] sm:$0xf] }
 0x298   :  { %1218 = vst [vmem:[#allocation5 + $0x68] sm:$0xff] %v1135_v24 }
 0x299   :  { %3493 = vst [vmem:[#allocation46_spill] sm:$0xff] %v3199_v18 }
 0x29a   :  { %v1163_v26 = vpop.f32.mrf.mxu2  ;;  %v1108_v27 = vpop.f32.mrf.mxu0 }
 0x29b   :  { %v1164_v29 = vadd.f32 %v1163_v26, %v3105_v1  ;;  %v1192_v31 = vpop.f32.mrf.mxu3  ;;  %v1109_v35 = vadd.f32 %v1108_v27, %v3099_v20  ;;  %v1137_v36 = vpop.f32.mrf.mxu1  ;;  %v3207_v27 = vld [vmem:[#allocation17 + $0x88] sm:$0xf] }
 0x29c   :  { %v1193_v43 = vadd.f32 %v1192_v31, %v3107_v9  ;;  %v1138_v44 = vadd.f32 %v1137_v36, %v3101_v5  ;;  %v3211_v31 = vld [vmem:[#allocation17 + $0x8c] sm:$0xf0]  ;;  %v3215_v36 = vld [vmem:[#allocation17 + $0x94] sm:$0xf0] }
 0x29d   :  { %1219 = vst [vmem:[#allocation5 + $0x70] sm:$0xff] %v1164_v29  ;;  %v3209_v29 = vld [vmem:[#allocation17 + $0x90] sm:$0xf0] }
 0x29e   :  { %1220 = vst [vmem:[#allocation5 + $0x78] sm:$0xff] %v1193_v43  ;;  %v3217_v43 = vld [vmem:[#allocation17 + $0xa4] sm:$0xf] }
 0x29f   :  { %1221 = vst [vmem:[#allocation5 + $0x80] sm:$0xff] %v1109_v35  ;;  %v3213_v35 = vld [vmem:[#allocation17 + $0x98] sm:$0xf0] }
 0x2a0   :  { %1222 = vst [vmem:[#allocation5 + $0x88] sm:$0xff] %v1138_v44  ;;  %v3219_v44 = vld [vmem:[#allocation17 + $0xa0] sm:$0xf] }
 0x2a2   :  { %v1166_v59 = vpop.f32.mrf.mxu2  ;;  %v1110_v61 = vpop.f32.mrf.mxu0 }
 0x2a3   :  { %v1167_v32 = vadd.f32 %v1166_v59, %v3105_v1  ;;  %v1195_v33 = vpop.f32.mrf.mxu3  ;;  %v1111_v34 = vadd.f32 %v1110_v61, %v3099_v20  ;;  %v1139_v38 = vpop.f32.mrf.mxu1  ;;  %v3221_v59 = vld [vmem:[#allocation17 + $0xac] sm:$0xf]  ;;  %v3223_v61 = vld [vmem:[#allocation17 + $0xa8] sm:$0xf] }
 0x2a4   :  { %v1196_v40 = vadd.f32 %v1195_v33, %v3107_v9  ;;  %v1140_v8 = vadd.f32 %v1139_v38, %v3101_v5  ;;  %v3227_v33 = vld [vmem:[#allocation17 + $0xac] sm:$0xf0]  ;;  %v3231_v38 = vld [vmem:[#allocation17 + $0xb4] sm:$0xf0] }
 0x2a5   :  { %1223 = vst [vmem:[#allocation5 + $0x90] sm:$0xff] %v1167_v32  ;;  %v3225_v32 = vld [vmem:[#allocation17 + $0xb0] sm:$0xf0] }
 0x2a6   :  { %1224 = vst [vmem:[#allocation5 + $0x98] sm:$0xff] %v1196_v40  ;;  %v3233_v40 = vld [vmem:[#allocation17 + $0xc4] sm:$0xf] }
 0x2a7   :  { %1225 = vst [vmem:[#allocation5 + $0xa0] sm:$0xff] %v1111_v34  ;;  %v3229_v34 = vld [vmem:[#allocation17 + $0xb8] sm:$0xf0] }
 0x2a8   :  { %1226 = vst [vmem:[#allocation5 + $0xa8] sm:$0xff] %v1140_v8 }
 0x2aa   :  { %v1168_v19 = vpop.f32.mrf.mxu2  ;;  %v1113_v16 = vpop.f32.mrf.mxu0 }
 0x2ab   :  { %v1169_v4 = vadd.f32 %v1168_v19, %v3105_v1  ;;  %v1197_v2 = vpop.f32.mrf.mxu3  ;;  %v1114_v3 = vadd.f32 %v1113_v16, %v3099_v20  ;;  %v1142_v17 = vpop.f32.mrf.mxu1  ;;  %v3235_v16 = vld [vmem:[#allocation17 + $0xc0] sm:$0xf] }
 0x2ac   :  { %v1198_v24 = vadd.f32 %v1197_v2, %v3107_v9  ;;  %v1143_v26 = vadd.f32 %v1142_v17, %v3101_v5  ;;  %3494 = vst [vmem:[#allocation47_spill] sm:$0xff] %v3235_v16  ;;  %v3239_v2 = vld [vmem:[#allocation17 + $0xc8] sm:$0xf] }
 0x2ad   :  { %1227 = vst [vmem:[#allocation5 + $0xb0] sm:$0xff] %v1169_v4  ;;  %v3237_v4 = vld [vmem:[#allocation17 + $0xcc] sm:$0xf] }
 0x2ae   :  { %1228 = vst [vmem:[#allocation5 + $0xb8] sm:$0xff] %v1198_v24 }
 0x2af   :  { %1229 = vst [vmem:[#allocation5 + $0xc0] sm:$0xff] %v1114_v3 }
 0x2b0   :  { %1230 = vst [vmem:[#allocation5 + $0xc8] sm:$0xff] %v1143_v26 }
 0x2b1   :  { %3495 = vst [vmem:[#allocation48_spill] sm:$0xff] %v3237_v4 }
 0x2b2   :  { %v1171_v8 = vpop.f32.mrf.mxu2  ;;  %v1115_v19 = vpop.f32.mrf.mxu0  ;;  %3496 = vst [vmem:[#allocation49_spill] sm:$0xff] %v3239_v2 }
 0x2b3   :  { %v1172_v3 = vadd.f32 %v1171_v8, %v3105_v1  ;;  %v1200_v17 = vpop.f32.mrf.mxu3  ;;  %v1116_v24 = vadd.f32 %v1115_v19, %v3099_v20  ;;  %v1144_v26 = vpop.f32.mrf.mxu1  ;;  %v3257_v8 = vld [vmem:[#allocation17 + $0xec] sm:$0xf]  ;;  %v3259_v20 = vld [vmem:[#allocation17 + $0xe8] sm:$0xf]  ;;  %v3261_v19 = vld [vmem:[#allocation17 + $0xf0] sm:$0xf0] }
 0x2b4   :  { %v1201_v56 = vadd.f32 %v1200_v17, %v3107_v9  ;;  %v1145_v45 = vadd.f32 %v1144_v26, %v3101_v5  ;;  %3497 = vst [vmem:[#allocation50_spill] sm:$0xff] %v3257_v8  ;;  %v3265_v17 = vld [vmem:[#allocation17 + $0xf8] sm:$0xf0]  ;;  %v3267_v5 = vld [vmem:[#allocation17 + $0xf4] sm:$0xf0] }
 0x2b5   :  { %1231 = vst [vmem:[#allocation5 + $0xd0] sm:$0xff] %v1172_v3 }
 0x2b6   :  { %1232 = vst [vmem:[#allocation5 + $0xd8] sm:$0xff] %v1201_v56  ;;  %v3501_v56 = vmov %v3135_v53 }
 0x2b7   :  { %3498 = vst [vmem:[#allocation51_spill] sm:$0xff] %v3261_v19 }
 0x2b8   :  { %1233 = vst [vmem:[#allocation5 + $0xe0] sm:$0xff] %v1116_v24  ;;  %v3502_v24 = vmov %v3129_v50 }
 0x2b9   :  { %3499 = vst [vmem:[#allocation52_spill] sm:$0xff] %v3265_v17 }
 0x2ba   :  { %3500 = vst [vmem:[#allocation53_spill] sm:$0xff] %v3267_v5  ;;  %v1173_v26 = vpop.f32.mrf.mxu2  ;;  %1629 = sbr.rel (%p1641_p2) target bundleno = 908 (0x38c), region = 114 }
 0x2bb   :  { %1234 = vst [vmem:[#allocation5 + $0xe8] sm:$0xff] %v1145_v45  ;;  %v1174_v28 = vadd.f32 %v1173_v26, %v3105_v1  ;;  %v1202_v63 = vpop.f32.mrf.mxu3 }
 0x2bc   :  { %v1203_v3 = vadd.f32 %v1202_v63, %v3107_v9 }
 0x2bd   :  { %1235 = vst [vmem:[#allocation5 + $0xf0] sm:$0xff] %v1174_v28 }
 0x2be   :  { %1236 = vst [vmem:[#allocation5 + $0xf8] sm:$0xff] %v1203_v3 }
 0x2bf LB: > { %v2168_v1 = vor.u32 %v3263_v46, %v3255_v49  ;;  %v3503_v19 = vld [vmem:[#allocation51_spill] sm:$0xff]  ;;  %v3505_v8 = vld [vmem:[#allocation50_spill] sm:$0xff]  ;;  %v2156_v26 = vor.u32 %v3233_v40, %v3243_v57  ;;  %v3508_v4 = vld [vmem:[#allocation48_spill] sm:$0xff]  ;;  %v2136_v24 = vor.u32 %v3227_v33, %v3219_v44  ;;  %s2050_s29 = sshll.u32 %s2692_s8, 3  ;;  %s2692_s8 = sphi %s3285_s8, %s1276_s8   ;;  %v2688_v50 = vphi %v3129_v50, %v3535_v50   ;;  %v2684_v53 = vphi %v3135_v53, %v3534_v53  }
 0x2c0   : > { %v2172_v9 = vor.u32 %v3253_v55, %v3503_v19  ;;  %v3504_v17 = vld [vmem:[#allocation52_spill] sm:$0xff]  ;;  %v3507_v16 = vld [vmem:[#allocation47_spill] sm:$0xff]  ;;  %v2164_v3 = vor.u32 %v3508_v4, %v3247_v51  ;;  %v3509_v2 = vld [vmem:[#allocation49_spill] sm:$0xff]  ;;  %s1282_s30 = sshra.s32 %s2050_s29, 3  ;;  %s1576_s11 = scalar_lea.vmem [#allocation4], %s2050_s29 }
 0x2c1   : > { %v2180_v45 = vor.u32 %v3505_v8, %v3504_v17  ;;  %v3506_v5 = vld [vmem:[#allocation53_spill] sm:$0xff]  ;;  %1452 = vmatpush.bf16.msra.mxu0 %v2168_v1  ;;  %v2152_v28 = vor.u32 %v3245_v52, %v3507_v16  ;;  %v2160_v56 = vor.u32 %v3251_v54, %v3509_v2  ;;  %v2140_v1 = vor.u32 %v3217_v43, %v3225_v32  ;;  %v3510_v18 = vld [vmem:[#allocation46_spill] sm:$0xff]  ;;  %v3511_v15 = vld [vmem:[#allocation43_spill] sm:$0xff]  ;;  %s2319_s10 = sshll.u32 %s1282_s30, 5 }
 0x2c2   : > { %v2176_v63 = vor.u32 %v3506_v5, %v3259_v20  ;;  %1465 = vmatpush.bf16.msra.mxu1 %v2172_v9  ;;  %v2148_v9 = vor.u32 %v3221_v59, %v3229_v34  ;;  %v3512_v13 = vld [vmem:[#allocation41_spill] sm:$0xff]  ;;  %v3513_v6 = vld [vmem:[#allocation44_spill] sm:$0xff]  ;;  %v3514_v7 = vld [vmem:[#allocation42_spill] sm:$0xff]  ;;  %s1286_s1 = scalar_lea.vmem [#allocation5], %s2319_s10 }
 0x2c3   : > { %1491 = vmatpush.bf16.msra.mxu3 %v2180_v45  ;;  %v2144_v45 = vor.u32 %v3231_v38, %v3223_v61  ;;  %v3515_v0 = vld [vmem:[#allocation45_spill] sm:$0xff]  ;;  %v3516_v11 = vld [vmem:[#allocation38_spill] sm:$0xff]  ;;  %v3517_v12 = vld [vmem:[#allocation39_spill] sm:$0xff] }
 0x2c4   : > { %1478 = vmatpush.bf16.msra.mxu2 %v2176_v63  ;;  %v2120_v63 = vor.u32 %v3211_v31, %v3201_v22  ;;  %v3518_v10 = vld [vmem:[#allocation37_spill] sm:$0xff]  ;;  %v3519_v14 = vld [vmem:[#allocation40_spill] sm:$0xff]  ;;  %v3524_v5 = vld [vmem:[#allocation31_spill] sm:$0xff] }
 0x2c5   : > { %1453 = vmatpush.bf16.msra.mxu0 %v2152_v28  ;;  %v2124_v28 = vor.u32 %v3510_v18, %v3209_v29  ;;  %v3522_v2 = vld [vmem:[#allocation36_spill] sm:$0xff] }
 0x2c6   : > { %1466 = vmatpush.bf16.msra.mxu1 %v2156_v26  ;;  %v2132_v26 = vor.u32 %v3203_v23, %v3213_v35  ;;  %v3527_v8 = vld [vmem:[#allocation32_spill] sm:$0xff] }
 0x2c7   : > { %1492 = vmatpush.bf16.msra.mxu3 %v2164_v3  ;;  %v2128_v3 = vor.u32 %v3215_v36, %v3207_v27 }
 0x2c8   : > { %1479 = vmatpush.bf16.msra.mxu2 %v2160_v56  ;;  %v2104_v56 = vor.u32 %v3191_v37, %v3183_v21 }
 0x2c9   : > { %1454 = vmatpush.bf16.msra.mxu0 %v2136_v24  ;;  %v2108_v24 = vor.u32 %v3512_v13, %v3511_v15 }
 0x2ca   : > { %1467 = vmatpush.bf16.msra.mxu1 %v2140_v1  ;;  %v2116_v1 = vor.u32 %v3514_v7, %v3513_v6  ;;  %v3526_v6 = vld [vmem:[#allocation26_spill] sm:$0xff] }
 0x2cb   : > { %1493 = vmatpush.bf16.msra.mxu3 %v2148_v9  ;;  %v2112_v9 = vor.u32 %v3515_v0, %v3187_v41 }
 0x2cc   : > { %1480 = vmatpush.bf16.msra.mxu2 %v2144_v45  ;;  %v2088_v45 = vor.u32 %v3516_v11, %v3167_v30 }
 0x2cd   : > { %1455 = vmatpush.bf16.msra.mxu0 %v2120_v63  ;;  %v2092_v63 = vor.u32 %v3165_v47, %v3173_v60 }
 0x2ce   : > { %1468 = vmatpush.bf16.msra.mxu1 %v2124_v28  ;;  %v2100_v28 = vor.u32 %v3169_v25, %v3517_v12 }
 0x2cf   : > { %1494 = vmatpush.bf16.msra.mxu3 %v2132_v26  ;;  %v2096_v26 = vor.u32 %v3519_v14, %v3518_v10 }
 0x2d0   : > { %1481 = vmatpush.bf16.msra.mxu2 %v2128_v3  ;;  %v2072_v3 = vor.u32 %v3157_v42, %v3147_v62 }
 0x2d1   : > { %1456 = vmatpush.bf16.msra.mxu0 %v2104_v56  ;;  %v2076_v56 = vor.u32 %v3145_v58, %v3155_v39 }
 0x2d2   : > { %1469 = vmatpush.bf16.msra.mxu1 %v2108_v24  ;;  %v3520_v24 = vld [vmem:[#allocation34_spill] sm:$0xff] }
 0x2d3   : > { %1495 = vmatpush.bf16.msra.mxu3 %v2116_v1  ;;  %v2084_v0 = vor.u32 %v3520_v24, %v3159_v48  ;;  %v3521_v1 = vld [vmem:[#allocation35_spill] sm:$0xff]  ;;  %v3529_v24 = vld [vmem:[#allocation29_spill] sm:$0xff] }
 0x2d4   : > { %1482 = vmatpush.bf16.msra.mxu2 %v2112_v9  ;;  %v2080_v4 = vor.u32 %v3522_v2, %v3521_v1  ;;  %v3523_v9 = vld [vmem:[#allocation27_spill] sm:$0xff]  ;;  %v1291_v2 = vpack.c.bf16 %v2688_v50, %v2688_v50 }
 0x2d5   : > { %1457 = vmatpush.bf16.msra.mxu0 %v2088_v45  ;;  %v2056_v45 = vor.u32 %v3524_v5, %v3523_v9 }
 0x2d6   : > { %1470 = vmatpush.bf16.msra.mxu1 %v2092_v63  ;;  %v3525_v63 = vld [vmem:[#allocation30_spill] sm:$0xff] }
 0x2d7   : > { %1496 = vmatpush.bf16.msra.mxu3 %v2100_v28  ;;  %v2060_v7 = vor.u32 %v3526_v6, %v3525_v63  ;;  %v3528_v28 = vld [vmem:[#allocation28_spill] sm:$0xff]  ;;  %v1287_v6 = vld [vmem:[%s1286_s1] sm:$0xff] }
 0x2d8   : > { %1483 = vmatpush.bf16.msra.mxu2 %v2096_v26  ;;  %v2068_v10 = vor.u32 %v3528_v28, %v3527_v8  ;;  %v3530_v26 = vld [vmem:[#allocation33_spill] sm:$0xff] }
 0x2d9   : > { %1458 = vmatpush.bf16.msra.mxu0 %v2072_v3  ;;  %v2064_v11 = vor.u32 %v3530_v26, %v3529_v24 }
 0x2da   : > { %1471 = vmatpush.bf16.msra.mxu1 %v2076_v56 }
 0x2db   : > { %1497 = vmatpush.bf16.msra.mxu3 %v2084_v0  ;;  %v1288_v0 = vld [vmem:[%s1286_s1 + $0x8] sm:$0xff] }
 0x2dc   : > { %1484 = vmatpush.bf16.msra.mxu2 %v2080_v4 }
 0x2dd   : > { %1459 = vmatpush.bf16.msra.mxu0 %v2056_v45 }
 0x2de   : > { %1472 = vmatpush.bf16.msra.mxu1 %v2060_v7 }
 0x2df   : > { %1498 = vmatpush.bf16.msra.mxu3 %v2068_v10  ;;  %v1290_v10 = vld [vmem:[%s1286_s1 + $0x18] sm:$0xff] }
 0x2e0   : > { %1485 = vmatpush.bf16.msra.mxu2 %v2064_v11  ;;  %1460 = vmatmul.bf16.vlgmr.msra.gmra.mxu0 %v1291_v2 }
 0x2e1   : > { %1473 = vmatmul.bf16.vlgmr.msra.gmra.mxu1 %v1291_v2 }
 0x2e2   : > { %1499 = vmatmul.bf16.vlgmr.msra.gmra.mxu3 %v1291_v2 }
 0x2e3   : > { %1486 = vmatmul.bf16.vlgmr.msra.gmra.mxu2 %v1291_v2 }
 0x35d   : > { %v1461_v4 = vpop.f32.mrf.mxu0 }
 0x35e   : > { %v1474_v8 = vpop.f32.mrf.mxu1  ;;  %v1504_v5 = vadd.f32 %v1461_v4, %v1287_v6  ;;  %v1289_v6 = vld [vmem:[%s1286_s1 + $0x10] sm:$0xff] }
 0x35f   : > { %v1505_v3 = vadd.f32 %v1474_v8, %v1288_v0 }
 0x360   : > { %v2181_v56 = vmul.f32 -1.442695, %v1504_v5 }
 0x361   : > { %v2182_v1 = vmul.f32 -1.442695, %v1505_v3 }
 0x362   : > { %2428 = vpow2.f32 %v2181_v56 }
 0x363   : > { %2430 = vpow2.f32 %v2182_v1 }
 0x365   : > { %v1500_v11 = vpop.f32.mrf.mxu3  ;;  %v1463_v45 = vpop.f32.mrf.mxu0 }
 0x366   : > { %v1487_v7 = vpop.f32.mrf.mxu2  ;;  %v1507_v9 = vadd.f32 %v1500_v11, %v1290_v10  ;;  %v1476_v63 = vpop.f32.mrf.mxu1 }
 0x367   : > { %v1506_v5 = vadd.f32 %v1487_v7, %v1289_v6  ;;  %v1572_v7 = vstv %s2692_s8  ;;  %s1276_s8 = sadd.s32 1, %s2692_s8  }
 0x368   : > { %v2183_v28 = vmul.f32 -1.442695, %v1507_v9  ;;  %v2429_v24 = vpop.eup %2428  ;;  %p1275_p4 = scmp.ge.s32.totalorder %s1276_s8, %s3541_s0 }
 0x369   : > { %v2431_v26 = vpop.eup %2430  ;;  %v1511_v2 = vadd.f32 1.0, %v2429_v24 }
 0x36a   : > { %2432 = vpow2.f32 %v2183_v28  ;;  %v1530_v12 = vadd.f32 1.0, %v2431_v26 }
 0x36b   : > { %2434 = vrcp.f32 %v1511_v2  ;;  %v1523_v63 = vand.u32 2147483648, %v1511_v2  ;;  %v1521_v26 = vand.u32 2147483647, %v1511_v2  ;;  %vm1517_vm15 = vweird.f32 %v1511_v2 }
 0x36c   : > { %2436 = vrcp.f32 %v1530_v12  ;;  %v1542_v28 = vand.u32 2147483648, %v1530_v12  ;;  %vm1536_vm0 = vweird.f32 %v1530_v12 }
 0x36d   : > { %v1502_v0 = vpop.f32.mrf.mxu3  ;;  %v1524_v15 = vor.u32 1.1754944e-38, %v1523_v63  ;;  %vm1522_vm3 = vcmp.eq.f32.partialorder %v1521_v26, 8.507059e+37 }
 0x36e   : > { %v1489_v4 = vpop.f32.mrf.mxu2  ;;  %v1540_v0 = vand.u32 2147483647, %v1530_v12 }
 0x370   : > { %v2433_v8 = vpop.eup %2432  ;;  %vm1541_vm4 = vcmp.eq.f32.partialorder %v1540_v0, 8.507059e+37 }
 0x371   : > { %v1550_v3 = vadd.f32 1.0, %v2433_v8  ;;  %v2435_v56 = vpop.eup %2434 }
 0x372   : > { %v2437_v1 = vpop.eup %2436  ;;  %v1513_v10 = vmul.f32 %v2435_v56, %v1511_v2  ;;  %vm1518_vm13 = vweird.f32 %v2435_v56  ;;  %v3531_v2 = vld [vmem:[#allocation25_spill] sm:$0xff] }
 0x373   : > { %2438 = vrcp.f32 %v1550_v3  ;;  %v1532_v11 = vmul.f32 %v2437_v1, %v1530_v12  ;;  %vm1537_vm14 = vweird.f32 %v2437_v1  ;;  %vm1519_vm1 = vmor %vm1517_vm15, %vm1518_vm13  ;;  %vm3368_vm5 = vcmp.lt.s32.totalorder %v1572_v7, %v3531_v2 }
 0x374   : > { %2440 = vtanh.f32 %v1506_v5  ;;  %v1514_v9 = vsub.f32 1.0, %v1513_v10  ;;  %vm1538_vm2 = vmor %vm1536_vm0, %vm1537_vm14  ;;  %v1543_v10 = vor.u32 1.1754944e-38, %v1542_v28  ;;  %vm1556_vm7 = vweird.f32 %v1550_v3 }
 0x375   : > { %v1533_v45 = vsub.f32 1.0, %v1532_v11 }
 0x376   : > { %v1515_v24 = vmul.f32 %v2435_v56, %v1514_v9 }
 0x377   : > { %v1534_v13 = vmul.f32 %v2437_v1, %v1533_v45 }
 0x378   : > { %v1516_v6 = vadd.f32 %v2435_v56, %v1515_v24 }
 0x379   : > { %v2439_v4 = vpop.eup %2438  ;;  %v1535_v5 = vadd.f32 %v2437_v1, %v1534_v13 }
 0x37a   : > { %v2441_v8 = vpop.eup %2440  ;;  %v1552_v14 = vmul.f32 %v2439_v4, %v1550_v3  ;;  %v1520_v11 = vsel %vm1519_vm1, %v2435_v56, %v1516_v6  ;;  %vm1557_vm6 = vweird.f32 %v2439_v4  ;;  %v1562_v56 = vand.u32 2147483648, %v1550_v3 }
 0x37b   : > { %v1525_v16 = vsel %vm1522_vm3, %v1524_v15, %v1520_v11  ;;  %v1539_v17 = vsel %vm1538_vm2, %v2437_v1, %v1535_v5  ;;  %v1560_v15 = vand.u32 2147483647, %v1550_v3  ;;  %vm1558_vm8 = vmor %vm1556_vm7, %vm1557_vm6 }
 0x37c   : > { %v1553_v9 = vsub.f32 1.0, %v1552_v14  ;;  %v1544_v45 = vsel %vm1541_vm4, %v1543_v10, %v1539_v17  ;;  %v1567_v18 = vmul.f32 %v2441_v8, %v1525_v16  ;;  %v1563_v17 = vor.u32 1.1754944e-38, %v1562_v56 }
 0x37d   : > { %v1566_v24 = vmul.f32 %v2684_v53, %v1544_v45  ;;  %vm1561_vm9 = vcmp.eq.f32.partialorder %v1560_v15, 8.507059e+37 }
 0x37e   : > { %v1554_v19 = vmul.f32 %v2439_v4, %v1553_v9 }
 0x37f   : > { %v1568_v63 = vadd.f32 %v1567_v18, %v1566_v24 }
 0x380   : > { %v1555_v13 = vadd.f32 %v2439_v4, %v1554_v19 }
 0x381   : > { %2442 = vtanh.f32 %v1568_v63  ;;  %v1575_v14 = vsel %vm3368_vm5, %v1568_v63, %v2684_v53  }
 0x382   : > { %v1559_v16 = vsel %vm1558_vm8, %v2439_v4, %v1555_v13  ;;  %v3534_v53 = vmov %v1575_v14  ;;  %v3536_v56 = vmov (%p1275_p4), %v1575_v14 }
 0x383   : > { %v1564_v28 = vsel %vm1561_vm9, %v1563_v17, %v1559_v16 }
 0x387   : > { %v2443_v1 = vpop.eup %2442  ;;  %1278 = sbr.rel (!%p1275_p4) target bundleno = 703 (0x2bf), region = 120 }
 0x388   : > { %v1570_v26 = vmul.f32 %v2443_v1, %v1564_v28 }
 0x38a   : > { %v1574_v18 = vsel %vm3368_vm5, %v1570_v26, %v2688_v50  }
 0x38b   : > { %1577 = vst [vmem:[%s1576_s11] sm:$0xff] %v1574_v18  ;;  %v3535_v50 = vmov %v1574_v18  ;;  %v3537_v24 = vmov (%p1275_p4), %v1574_v18 }
 0x38c PF:  { %1578 = vst [vmem:[#allocation2 + $0x8] sm:$0xff] %v2700_v24  ;;  %v2700_v24 = vphi %v3502_v24, %v3537_v24   ;;  %v2696_v56 = vphi %v3501_v56, %v3536_v56  }
 0x38d   :  { %1579 = vst [vmem:[#allocation3] sm:$0xff] %v2696_v56 }
 0x38e PF:  { %s1593_s14 = sshll.u32 %s3406_s9, 4  ;;  %s2713_s15 = smov [#allocation19]   ;;  %s1594_s14 = int_to_ptr.hbm [resolvable:$true] %s1593_s14 }
 0x38f   :  { %s1591_s0 = sshll.u32 %s2713_s15, 4  ;;  %s1592_s0 = int_to_ptr.vmem [resolvable:$true] %s1591_s0 }
 0x393   :  { %v1584_v50 = vld [vmem:[#allocation2 + $0x8] sm:$0xff] }
 0x394   :  { %1585 = vst [vmem:[#allocation19] sm:$0xff] %v1584_v50 }
 0x395   :  { %1596 = dma.vmem_to_hbm [thread:$0]  %s1592_s0, 128, %s1594_s14, [#allocation10]  }
 0x396   :  { %2660 = dma.done.wait [#allocation10], 128  }
 0x397   :  { %2661 = vsyncadd [#allocation10], 4294967168 }
 0x398   :  { %1601 = vsyncpa [#allocation9], 1 }
 0x399   :  { %1602 = vsyncpa [#allocation12], 1 }
 0x39a   :  { %1603 = vsyncpa [#allocation15], 1 }
 0x39b   :  { %1604 = vsyncpa [#allocation18], 1 }
 0x39c   :  { %1605 = vsyncpa [#allocation10], 1 }

</bundles_post_ra>
